<compile_context>
chip_gen: v6e
topology: v6e:2x2x1
jax: 0.10.0
libtpu: 0.0.40
codegen_flags: <defaults>
</compile_context>

<pallas_src>
import functools

import jax
import jax.numpy as jnp
from jax import lax
from jax.experimental import pallas as pl
from jax.experimental.pallas import tpu as pltpu


def _mhsa_kernel(x_ref, w_ref, b_ref, pos_ref, o_ref, *, heads, d, n, bpb):
    """One grid step: `bpb` batches packed along lanes of x_ref.

    x_ref   : (1, C, bpb*N)  bf16 activations (batch-major along lanes)
    w_ref   : (3C, C)        bf16 fused weight, rows = [K0,Q0,K1,Q1,...,V0..V_{h-1}]
    b_ref   : (3C, 1)        f32 fused bias (same row order)
    pos_ref : (C, N)         bf16 (rel_h + rel_w), per-head rows
    o_ref   : (bpb, C, N)    f32 output slab for this step
    """
    C = heads * d

    x = x_ref[0]                 # (C, bpb*N) bf16
    w = w_ref[...]               # (3C, C)    bf16
    b = b_ref[...]               # (3C, 1)    f32
    pos = pos_ref[...]           # (C, N)     bf16

    # Fused projection for every head and every batch in this step:
    # one wide MXU matmul (lanes = bpb*N), f32 accumulation, fused bias add.
    qkv = jnp.dot(w, x, preferred_element_type=jnp.float32) + b     # (3C, bpb*N)

    contract00 = (((0,), (0,)), ((), ()))

    # bpb * heads is small -> unrolled; direct stores into o_ref end each
    # head's live range (switch to lax.fori_loop + pl.ds if spills appear).
    for j in range(bpb):
        col0 = j * n
        for h in range(heads):
            row_kq = 2 * h * d
            # Direct aligned slice: rows [K_h ; Q_h] thanks to wrapper-side
            # weight reordering -- this is the logits LHS, no concatenate.
            kq = qkv[row_kq:row_kq + 2 * d, col0:col0 + n].astype(jnp.bfloat16)  # (2d,N)
            q = kq[d:, :]                                                        # (d, N)
            p = pos[h * d:(h + 1) * d, :]                                        # (d, N)
            rhs = jnp.concatenate([q, p], axis=0)                                # (2d,N)

            # Fused content-content + content-position logits, produced
            # TRANSPOSED (keys m on sublanes, queries n on lanes):
            #   energy_t[m, n] = sum_i k[i,m] q[i,n] + sum_i q[i,m] pos[i,n]
            energy_t = lax.dot_general(kq, rhs, contract00,
                                       preferred_element_type=jnp.float32)       # (N,N)

            # Numerically-stable softmax over keys (axis 0 = sublanes), kept
            # UNnormalized; the divide is folded into the (d, N) epilogue.
            mx = jnp.max(energy_t, axis=0, keepdims=True)        # (1, N)
            e = jnp.exp(energy_t - mx)                            # (N, N) f32
            l = jnp.sum(e, axis=0, keepdims=True)                 # (1, N)

            v = qkv[2 * C + h * d:2 * C + (h + 1) * d,
                    col0:col0 + n].astype(jnp.bfloat16)           # (d, N)
            # out_raw[i, n] = sum_m v[i, m] * e[m, n] -- standard MXU
            # orientation, no NxN transpose needed.
            out_raw = jnp.dot(v, e.astype(jnp.bfloat16),
                              preferred_element_type=jnp.float32)  # (d, N)

            # Lane-dense (d, 128) store directly into the output slab.
            o_ref[j, h * d:(h + 1) * d, :] = (
                out_raw * pl.reciprocal(l, approx=True)).astype(o_ref.dtype)


def mhsa_pallas(x, wq, bq, wk, bk, wv, bv, rel_h, rel_w, heads,
                batches_per_step=None):
    B, C, W, H = x.shape
    N = W * H
    d = C // heads

    # Default: all batches in ONE grid step (best on single-TC v5e/v6e).
    # On v7x (2 TensorCores) set batches_per_step=1 to shard batches across
    # cores via the "parallel" grid axis.
    if batches_per_step is None:
        batches_per_step = B
    bpb = batches_per_step
    assert B % bpb == 0
    steps = B // bpb

    # Pack activations: (steps, C, bpb*N), batch-major along lanes, bf16.
    x_packed = jnp.transpose(x.reshape(steps, bpb, C, N),
                             (0, 2, 1, 3)).reshape(steps, C, bpb * N)
    x_packed = x_packed.astype(jnp.bfloat16)

    # Fused projection weight, rows reordered as [K0,Q0,K1,Q1,...,V0..V_{h-1}]
    # so the kernel's logits LHS is a direct contiguous slice.
    wk_h = wk.reshape(heads, d, C)
    wq_h = wq.reshape(heads, d, C)
    kq_w = jnp.stack([wk_h, wq_h], axis=1).reshape(2 * C, C)
    w_fused = jnp.concatenate([kq_w, wv], axis=0).astype(jnp.bfloat16)   # (3C, C)

    kq_b = jnp.stack([bk.reshape(heads, d), bq.reshape(heads, d)],
                     axis=1).reshape(2 * C)
    b_fused = jnp.concatenate([kq_b, bv], axis=0).reshape(3 * C, 1)
    b_fused = b_fused.astype(jnp.float32)                                # (3C, 1)

    # (1,heads,d,1,H) + (1,heads,d,W,1) -> (heads*d, W*H) = (C, N), bf16
    # (it is an MXU operand; halves the resident DMA/VMEM).
    pos = (rel_h + rel_w).reshape(C, N).astype(jnp.bfloat16)

    kernel = functools.partial(_mhsa_kernel, heads=heads, d=d, n=N, bpb=bpb)

    out = pl.pallas_call(
        kernel,
        out_shape=jax.ShapeDtypeStruct((B, C, N), jnp.float32),
        grid_spec=pltpu.PrefetchScalarGridSpec(
            num_scalar_prefetch=0,
            grid=(steps,),
            in_specs=[
                pl.BlockSpec((1, C, bpb * N), lambda s: (s, 0, 0)),  # x (per step)
                pl.BlockSpec((3 * C, C), lambda s: (0, 0)),          # fused W (resident)
                pl.BlockSpec((3 * C, 1), lambda s: (0, 0)),          # fused bias (resident)
                pl.BlockSpec((C, N), lambda s: (0, 0)),              # rel pos (resident)
            ],
            out_specs=pl.BlockSpec((bpb, C, N), lambda s: (s, 0, 0)),
        ),
        compiler_params=pltpu.CompilerParams(
            dimension_semantics=("parallel",)),
    )(x_packed, w_fused, b_fused, pos)

    # (B, C, N) -> (B, C, W, H): identical to the torch .view on contiguous memory.
    return out.reshape(B, C, W, H)


def mhsa_reference(x, wq, bq, wk, bk, wv, bv, rel_h, rel_w, heads,
                   mxu_dtype=jnp.float32):
    """Pure-JAX reference mirroring the PyTorch forward.

    `mxu_dtype=jnp.bfloat16` mimics the kernel's precision policy (bf16 matmul
    operands, f32 accumulation); `jnp.float32` is the exact PyTorch math.
    """
    B, C, W, H = x.shape
    N = W * H
    d = C // heads
    cast = lambda a: a.astype(mxu_dtype)

    xf = x.reshape(B, C, N)

    def proj(w, b):
        y = jnp.einsum('oc,bcn->bon', cast(w), cast(xf),
                       preferred_element_type=jnp.float32) + b[None, :, None]
        return y.reshape(B, heads, d, N)

    q = proj(wq, bq)
    k = proj(wk, bk)
    v = proj(wv, bv)
    pos = (rel_h + rel_w).reshape(heads, d, N)

    cc = jnp.einsum('bhin,bhim->bhnm', cast(q), cast(k),
                    preferred_element_type=jnp.float32)
    cp = jnp.einsum('hin,bhim->bhnm', cast(pos), cast(q),
                    preferred_element_type=jnp.float32)
    att = jax.nn.softmax(cc + cp, axis=-1)
    out = jnp.einsum('bhim,bhnm->bhin', cast(v), cast(att),
                     preferred_element_type=jnp.float32)
    return out.reshape(B, C, W, H)


if __name__ == "__main__":
    # Small MHSA-consistent shapes: B=2, C=32, heads=4 (d=8), spatial 8x16 so
    # N = W*H = 128 (full MXU lane width per batch; B*N = 256 packed lanes).
    B, C, W, H, heads = 2, 32, 8, 16, 4
    d = C // heads

    key = jax.random.PRNGKey(0)
    keys = jax.random.split(key, 9)
    x = jax.random.normal(keys[0], (B, C, W, H), jnp.float32)

    # Conv2d(C, C, kernel_size=1) weights -> (C, C) matrices, biases (C,)
    wq = jax.random.normal(keys[1], (C, C), jnp.float32) * 0.1
    wk = jax.random.normal(keys[2], (C, C), jnp.float32) * 0.1
    wv = jax.random.normal(keys[3], (C, C), jnp.float32) * 0.1
    bq = jax.random.normal(keys[4], (C,), jnp.float32) * 0.1
    bk = jax.random.normal(keys[5], (C,), jnp.float32) * 0.1
    bv = jax.random.normal(keys[6], (C,), jnp.float32) * 0.1
    # rel_h: (1, heads, d, 1, H), rel_w: (1, heads, d, W, 1)  (torch.randn)
    rel_h = jax.random.normal(keys[7], (1, heads, d, 1, H), jnp.float32)
    rel_w = jax.random.normal(keys[8], (1, heads, d, W, 1), jnp.float32)

    out = mhsa_pallas(x, wq, bq, wk, bk, wv, bv, rel_h, rel_w, heads)
    out = jax.block_until_ready(out)
    assert out.shape == (B, C, W, H)

    # Primary check: reference with the SAME precision policy as the kernel
    # (bf16 MXU operands, f32 accumulation / softmax).
    ref_bf16 = mhsa_reference(x, wq, bq, wk, bk, wv, bv, rel_h, rel_w, heads,
                              mxu_dtype=jnp.bfloat16)
    err_bf16 = float(jnp.max(jnp.abs(out - ref_bf16)))
    assert jnp.allclose(out, ref_bf16, atol=3e-2, rtol=3e-2), err_bf16

    # Sanity check against the exact f32 (PyTorch-equivalent) math; looser
    # tolerance accounts for the kernel's bf16 MXU inputs.
    ref_f32 = mhsa_reference(x, wq, bq, wk, bk, wv, bv, rel_h, rel_w, heads,
                             mxu_dtype=jnp.float32)
    err_f32 = float(jnp.max(jnp.abs(out - ref_f32)))
    assert jnp.allclose(out, ref_f32, atol=1.5e-1, rtol=1.5e-1), err_f32

    print("KERNEL_OK")
</pallas_src>

<mosaic_0001>
module attributes {stable_mosaic.version = 11 : i64} {
  func.func @_mhsa_kernel(%arg0: i32, %arg1: memref<1x32x256xbf16, #tpu.memory_space<vmem>>, %arg2: memref<96x32xbf16, #tpu.memory_space<vmem>>, %arg3: memref<96x1xf32, #tpu.memory_space<vmem>>, %arg4: memref<32x128xbf16, #tpu.memory_space<vmem>>, %arg5: memref<2x32x128xf32, #tpu.memory_space<vmem>>) attributes {dimension_semantics = [#tpu.dimension_semantics<parallel>], iteration_bounds = array<i64: 1>, scalar_prefetch = 0 : i64, scratch_operands = 0 : i64, tpu.core_type = #tpu.core_type<tc>, window_params = [{transform_indices = @transform_0, window_bounds = array<i64: 1, 32, 256>}, {pipeline_mode = #tpu.pipeline_mode<synchronous>, transform_indices = @transform_1, window_bounds = array<i64: 96, 32>}, {pipeline_mode = #tpu.pipeline_mode<synchronous>, transform_indices = @transform_2, window_bounds = array<i64: 96, 1>}, {pipeline_mode = #tpu.pipeline_mode<synchronous>, transform_indices = @transform_3, window_bounds = array<i64: 32, 128>}, {transform_indices = @transform_4, window_bounds = array<i64: 2, 32, 128>}]} {
    %c0 = arith.constant 0 : index
    %c0_0 = arith.constant 0 : index
    %c0_1 = arith.constant 0 : index
    %0 = vector.load %arg1[%c0, %c0_0, %c0_1] : memref<1x32x256xbf16, #tpu.memory_space<vmem>>, vector<1x32x256xbf16>
    %1 = vector.shape_cast %0 : vector<1x32x256xbf16> to vector<32x256xbf16>
    %c0_2 = arith.constant 0 : index
    %c0_3 = arith.constant 0 : index
    %2 = vector.load %arg2[%c0_2, %c0_3] : memref<96x32xbf16, #tpu.memory_space<vmem>>, vector<96x32xbf16>
    %c0_4 = arith.constant 0 : index
    %c0_5 = arith.constant 0 : index
    %3 = vector.load %arg3[%c0_4, %c0_5] : memref<96x1xf32, #tpu.memory_space<vmem>>, vector<96x1xf32>
    %c0_6 = arith.constant 0 : index
    %c0_7 = arith.constant 0 : index
    %4 = vector.load %arg4[%c0_6, %c0_7] : memref<32x128xbf16, #tpu.memory_space<vmem>>, vector<32x128xbf16>
    %cst = arith.constant dense<0.000000e+00> : vector<96x256xf32>
    %5 = tpu.matmul %2, %1, %cst {dimension_numbers = #tpu.dot_dimension_numbers<[1], [0], [0], [1], [0, 0, 1, 1], [], []>} : vector<96x32xbf16>, vector<32x256xbf16>, vector<96x256xf32> -> vector<96x256xf32>
    %6 = vector.broadcast %3 : vector<96x1xf32> to vector<96x256xf32>
    %7 = arith.addf %5, %6 : vector<96x256xf32>
    %8 = vector.extract_strided_slice %7 {offsets = [0, 0], sizes = [16, 128], strides = [1, 1]} : vector<96x256xf32> to vector<16x128xf32>
    %9 = arith.truncf %8 : vector<16x128xf32> to vector<16x128xbf16>
    %10 = vector.extract_strided_slice %9 {offsets = [8, 0], sizes = [8, 128], strides = [1, 1]} : vector<16x128xbf16> to vector<8x128xbf16>
    %11 = vector.extract_strided_slice %4 {offsets = [0, 0], sizes = [8, 128], strides = [1, 1]} : vector<32x128xbf16> to vector<8x128xbf16>
    %12 = tpu.concatenate %10, %11 in 0 : vector<8x128xbf16>, vector<8x128xbf16> -> vector<16x128xbf16>
    %cst_8 = arith.constant dense<0.000000e+00> : vector<128x128xf32>
    %13 = tpu.matmul %9, %12, %cst_8 {dimension_numbers = #tpu.dot_dimension_numbers<[0], [0], [1], [1], [0, 1, 1, 1], [], []>} : vector<16x128xbf16>, vector<16x128xbf16>, vector<128x128xf32> -> vector<128x128xf32>
    %cst_9 = arith.constant dense<0xFF800000> : vector<128xf32>
    %14 = vector.multi_reduction <maximumf>, %13, %cst_9 [0] : vector<128x128xf32> to vector<128xf32>
    %15 = vector.shape_cast %14 : vector<128xf32> to vector<1x128xf32>
    %16 = vector.broadcast %15 : vector<1x128xf32> to vector<128x128xf32>
    %17 = arith.subf %13, %16 : vector<128x128xf32>
    %18 = math.exp %17 : vector<128x128xf32>
    %cst_10 = arith.constant dense<0.000000e+00> : vector<128xf32>
    %19 = vector.multi_reduction <add>, %18, %cst_10 [0] : vector<128x128xf32> to vector<128xf32>
    %20 = vector.shape_cast %19 : vector<128xf32> to vector<1x128xf32>
    %21 = vector.extract_strided_slice %7 {offsets = [64, 0], sizes = [8, 128], strides = [1, 1]} : vector<96x256xf32> to vector<8x128xf32>
    %22 = arith.truncf %21 : vector<8x128xf32> to vector<8x128xbf16>
    %23 = arith.truncf %18 : vector<128x128xf32> to vector<128x128xbf16>
    %cst_11 = arith.constant dense<0.000000e+00> : vector<8x128xf32>
    %24 = tpu.matmul %22, %23, %cst_11 {dimension_numbers = #tpu.dot_dimension_numbers<[1], [0], [0], [1], [0, 0, 1, 1], [], []>} : vector<8x128xbf16>, vector<128x128xbf16>, vector<8x128xf32> -> vector<8x128xf32>
    %25 = tpu.reciprocal %20 {approx = true} : vector<1x128xf32> -> vector<1x128xf32>
    %26 = vector.broadcast %25 : vector<1x128xf32> to vector<8x128xf32>
    %27 = arith.mulf %24, %26 : vector<8x128xf32>
    %c0_12 = arith.constant 0 : index
    %c0_13 = arith.constant 0 : index
    %c0_14 = arith.constant 0 : index
    %28 = vector.load %arg5[%c0_12, %c0_13, %c0_14] : memref<2x32x128xf32, #tpu.memory_space<vmem>>, vector<1x8x128xf32>
    %29 = vector.shape_cast %28 : vector<1x8x128xf32> to vector<8x128xf32>
    %30 = vector.shape_cast %27 : vector<8x128xf32> to vector<1x8x128xf32>
    tpu.vector_store %arg5[%c0_12, %c0_13, %c0_14], %30 {strides = array<i32>} : memref<2x32x128xf32, #tpu.memory_space<vmem>>, vector<1x8x128xf32>,
    %31 = vector.extract_strided_slice %7 {offsets = [16, 0], sizes = [16, 128], strides = [1, 1]} : vector<96x256xf32> to vector<16x128xf32>
    %32 = arith.truncf %31 : vector<16x128xf32> to vector<16x128xbf16>
    %33 = vector.extract_strided_slice %32 {offsets = [8, 0], sizes = [8, 128], strides = [1, 1]} : vector<16x128xbf16> to vector<8x128xbf16>
    %34 = vector.extract_strided_slice %4 {offsets = [8, 0], sizes = [8, 128], strides = [1, 1]} : vector<32x128xbf16> to vector<8x128xbf16>
    %35 = tpu.concatenate %33, %34 in 0 : vector<8x128xbf16>, vector<8x128xbf16> -> vector<16x128xbf16>
    %cst_15 = arith.constant dense<0.000000e+00> : vector<128x128xf32>
    %36 = tpu.matmul %32, %35, %cst_15 {dimension_numbers = #tpu.dot_dimension_numbers<[0], [0], [1], [1], [0, 1, 1, 1], [], []>} : vector<16x128xbf16>, vector<16x128xbf16>, vector<128x128xf32> -> vector<128x128xf32>
    %cst_16 = arith.constant dense<0xFF800000> : vector<128xf32>
    %37 = vector.multi_reduction <maximumf>, %36, %cst_16 [0] : vector<128x128xf32> to vector<128xf32>
    %38 = vector.shape_cast %37 : vector<128xf32> to vector<1x128xf32>
    %39 = vector.broadcast %38 : vector<1x128xf32> to vector<128x128xf32>
    %40 = arith.subf %36, %39 : vector<128x128xf32>
    %41 = math.exp %40 : vector<128x128xf32>
    %cst_17 = arith.constant dense<0.000000e+00> : vector<128xf32>
    %42 = vector.multi_reduction <add>, %41, %cst_17 [0] : vector<128x128xf32> to vector<128xf32>
    %43 = vector.shape_cast %42 : vector<128xf32> to vector<1x128xf32>
    %44 = vector.extract_strided_slice %7 {offsets = [72, 0], sizes = [8, 128], strides = [1, 1]} : vector<96x256xf32> to vector<8x128xf32>
    %45 = arith.truncf %44 : vector<8x128xf32> to vector<8x128xbf16>
    %46 = arith.truncf %41 : vector<128x128xf32> to vector<128x128xbf16>
    %cst_18 = arith.constant dense<0.000000e+00> : vector<8x128xf32>
    %47 = tpu.matmul %45, %46, %cst_18 {dimension_numbers = #tpu.dot_dimension_numbers<[1], [0], [0], [1], [0, 0, 1, 1], [], []>} : vector<8x128xbf16>, vector<128x128xbf16>, vector<8x128xf32> -> vector<8x128xf32>
    %48 = tpu.reciprocal %43 {approx = true} : vector<1x128xf32> -> vector<1x128xf32>
    %49 = vector.broadcast %48 : vector<1x128xf32> to vector<8x128xf32>
    %50 = arith.mulf %47, %49 : vector<8x128xf32>
    %c0_19 = arith.constant 0 : index
    %c8 = arith.constant 8 : index
    %c0_20 = arith.constant 0 : index
    %51 = vector.load %arg5[%c0_19, %c8, %c0_20] : memref<2x32x128xf32, #tpu.memory_space<vmem>>, vector<1x8x128xf32>
    %52 = vector.shape_cast %51 : vector<1x8x128xf32> to vector<8x128xf32>
    %53 = vector.shape_cast %50 : vector<8x128xf32> to vector<1x8x128xf32>
    tpu.vector_store %arg5[%c0_19, %c8, %c0_20], %53 {strides = array<i32>} : memref<2x32x128xf32, #tpu.memory_space<vmem>>, vector<1x8x128xf32>,
    %54 = vector.extract_strided_slice %7 {offsets = [32, 0], sizes = [16, 128], strides = [1, 1]} : vector<96x256xf32> to vector<16x128xf32>
    %55 = arith.truncf %54 : vector<16x128xf32> to vector<16x128xbf16>
    %56 = vector.extract_strided_slice %55 {offsets = [8, 0], sizes = [8, 128], strides = [1, 1]} : vector<16x128xbf16> to vector<8x128xbf16>
    %57 = vector.extract_strided_slice %4 {offsets = [16, 0], sizes = [8, 128], strides = [1, 1]} : vector<32x128xbf16> to vector<8x128xbf16>
    %58 = tpu.concatenate %56, %57 in 0 : vector<8x128xbf16>, vector<8x128xbf16> -> vector<16x128xbf16>
    %cst_21 = arith.constant dense<0.000000e+00> : vector<128x128xf32>
    %59 = tpu.matmul %55, %58, %cst_21 {dimension_numbers = #tpu.dot_dimension_numbers<[0], [0], [1], [1], [0, 1, 1, 1], [], []>} : vector<16x128xbf16>, vector<16x128xbf16>, vector<128x128xf32> -> vector<128x128xf32>
    %cst_22 = arith.constant dense<0xFF800000> : vector<128xf32>
    %60 = vector.multi_reduction <maximumf>, %59, %cst_22 [0] : vector<128x128xf32> to vector<128xf32>
    %61 = vector.shape_cast %60 : vector<128xf32> to vector<1x128xf32>
    %62 = vector.broadcast %61 : vector<1x128xf32> to vector<128x128xf32>
    %63 = arith.subf %59, %62 : vector<128x128xf32>
    %64 = math.exp %63 : vector<128x128xf32>
    %cst_23 = arith.constant dense<0.000000e+00> : vector<128xf32>
    %65 = vector.multi_reduction <add>, %64, %cst_23 [0] : vector<128x128xf32> to vector<128xf32>
    %66 = vector.shape_cast %65 : vector<128xf32> to vector<1x128xf32>
    %67 = vector.extract_strided_slice %7 {offsets = [80, 0], sizes = [8, 128], strides = [1, 1]} : vector<96x256xf32> to vector<8x128xf32>
    %68 = arith.truncf %67 : vector<8x128xf32> to vector<8x128xbf16>
    %69 = arith.truncf %64 : vector<128x128xf32> to vector<128x128xbf16>
    %cst_24 = arith.constant dense<0.000000e+00> : vector<8x128xf32>
    %70 = tpu.matmul %68, %69, %cst_24 {dimension_numbers = #tpu.dot_dimension_numbers<[1], [0], [0], [1], [0, 0, 1, 1], [], []>} : vector<8x128xbf16>, vector<128x128xbf16>, vector<8x128xf32> -> vector<8x128xf32>
    %71 = tpu.reciprocal %66 {approx = true} : vector<1x128xf32> -> vector<1x128xf32>
    %72 = vector.broadcast %71 : vector<1x128xf32> to vector<8x128xf32>
    %73 = arith.mulf %70, %72 : vector<8x128xf32>
    %c0_25 = arith.constant 0 : index
    %c16 = arith.constant 16 : index
    %c0_26 = arith.constant 0 : index
    %74 = vector.load %arg5[%c0_25, %c16, %c0_26] : memref<2x32x128xf32, #tpu.memory_space<vmem>>, vector<1x8x128xf32>
    %75 = vector.shape_cast %74 : vector<1x8x128xf32> to vector<8x128xf32>
    %76 = vector.shape_cast %73 : vector<8x128xf32> to vector<1x8x128xf32>
    tpu.vector_store %arg5[%c0_25, %c16, %c0_26], %76 {strides = array<i32>} : memref<2x32x128xf32, #tpu.memory_space<vmem>>, vector<1x8x128xf32>,
    %77 = vector.extract_strided_slice %7 {offsets = [48, 0], sizes = [16, 128], strides = [1, 1]} : vector<96x256xf32> to vector<16x128xf32>
    %78 = arith.truncf %77 : vector<16x128xf32> to vector<16x128xbf16>
    %79 = vector.extract_strided_slice %78 {offsets = [8, 0], sizes = [8, 128], strides = [1, 1]} : vector<16x128xbf16> to vector<8x128xbf16>
    %80 = vector.extract_strided_slice %4 {offsets = [24, 0], sizes = [8, 128], strides = [1, 1]} : vector<32x128xbf16> to vector<8x128xbf16>
    %81 = tpu.concatenate %79, %80 in 0 : vector<8x128xbf16>, vector<8x128xbf16> -> vector<16x128xbf16>
    %cst_27 = arith.constant dense<0.000000e+00> : vector<128x128xf32>
    %82 = tpu.matmul %78, %81, %cst_27 {dimension_numbers = #tpu.dot_dimension_numbers<[0], [0], [1], [1], [0, 1, 1, 1], [], []>} : vector<16x128xbf16>, vector<16x128xbf16>, vector<128x128xf32> -> vector<128x128xf32>
    %cst_28 = arith.constant dense<0xFF800000> : vector<128xf32>
    %83 = vector.multi_reduction <maximumf>, %82, %cst_28 [0] : vector<128x128xf32> to vector<128xf32>
    %84 = vector.shape_cast %83 : vector<128xf32> to vector<1x128xf32>
    %85 = vector.broadcast %84 : vector<1x128xf32> to vector<128x128xf32>
    %86 = arith.subf %82, %85 : vector<128x128xf32>
    %87 = math.exp %86 : vector<128x128xf32>
    %cst_29 = arith.constant dense<0.000000e+00> : vector<128xf32>
    %88 = vector.multi_reduction <add>, %87, %cst_29 [0] : vector<128x128xf32> to vector<128xf32>
    %89 = vector.shape_cast %88 : vector<128xf32> to vector<1x128xf32>
    %90 = vector.extract_strided_slice %7 {offsets = [88, 0], sizes = [8, 128], strides = [1, 1]} : vector<96x256xf32> to vector<8x128xf32>
    %91 = arith.truncf %90 : vector<8x128xf32> to vector<8x128xbf16>
    %92 = arith.truncf %87 : vector<128x128xf32> to vector<128x128xbf16>
    %cst_30 = arith.constant dense<0.000000e+00> : vector<8x128xf32>
    %93 = tpu.matmul %91, %92, %cst_30 {dimension_numbers = #tpu.dot_dimension_numbers<[1], [0], [0], [1], [0, 0, 1, 1], [], []>} : vector<8x128xbf16>, vector<128x128xbf16>, vector<8x128xf32> -> vector<8x128xf32>
    %94 = tpu.reciprocal %89 {approx = true} : vector<1x128xf32> -> vector<1x128xf32>
    %95 = vector.broadcast %94 : vector<1x128xf32> to vector<8x128xf32>
    %96 = arith.mulf %93, %95 : vector<8x128xf32>
    %c0_31 = arith.constant 0 : index
    %c24 = arith.constant 24 : index
    %c0_32 = arith.constant 0 : index
    %97 = vector.load %arg5[%c0_31, %c24, %c0_32] : memref<2x32x128xf32, #tpu.memory_space<vmem>>, vector<1x8x128xf32>
    %98 = vector.shape_cast %97 : vector<1x8x128xf32> to vector<8x128xf32>
    %99 = vector.shape_cast %96 : vector<8x128xf32> to vector<1x8x128xf32>
    tpu.vector_store %arg5[%c0_31, %c24, %c0_32], %99 {strides = array<i32>} : memref<2x32x128xf32, #tpu.memory_space<vmem>>, vector<1x8x128xf32>,
    %100 = vector.extract_strided_slice %7 {offsets = [0, 128], sizes = [16, 128], strides = [1, 1]} : vector<96x256xf32> to vector<16x128xf32>
    %101 = arith.truncf %100 : vector<16x128xf32> to vector<16x128xbf16>
    %102 = vector.extract_strided_slice %101 {offsets = [8, 0], sizes = [8, 128], strides = [1, 1]} : vector<16x128xbf16> to vector<8x128xbf16>
    %103 = vector.extract_strided_slice %4 {offsets = [0, 0], sizes = [8, 128], strides = [1, 1]} : vector<32x128xbf16> to vector<8x128xbf16>
    %104 = tpu.concatenate %102, %103 in 0 : vector<8x128xbf16>, vector<8x128xbf16> -> vector<16x128xbf16>
    %cst_33 = arith.constant dense<0.000000e+00> : vector<128x128xf32>
    %105 = tpu.matmul %101, %104, %cst_33 {dimension_numbers = #tpu.dot_dimension_numbers<[0], [0], [1], [1], [0, 1, 1, 1], [], []>} : vector<16x128xbf16>, vector<16x128xbf16>, vector<128x128xf32> -> vector<128x128xf32>
    %cst_34 = arith.constant dense<0xFF800000> : vector<128xf32>
    %106 = vector.multi_reduction <maximumf>, %105, %cst_34 [0] : vector<128x128xf32> to vector<128xf32>
    %107 = vector.shape_cast %106 : vector<128xf32> to vector<1x128xf32>
    %108 = vector.broadcast %107 : vector<1x128xf32> to vector<128x128xf32>
    %109 = arith.subf %105, %108 : vector<128x128xf32>
    %110 = math.exp %109 : vector<128x128xf32>
    %cst_35 = arith.constant dense<0.000000e+00> : vector<128xf32>
    %111 = vector.multi_reduction <add>, %110, %cst_35 [0] : vector<128x128xf32> to vector<128xf32>
    %112 = vector.shape_cast %111 : vector<128xf32> to vector<1x128xf32>
    %113 = vector.extract_strided_slice %7 {offsets = [64, 128], sizes = [8, 128], strides = [1, 1]} : vector<96x256xf32> to vector<8x128xf32>
    %114 = arith.truncf %113 : vector<8x128xf32> to vector<8x128xbf16>
    %115 = arith.truncf %110 : vector<128x128xf32> to vector<128x128xbf16>
    %cst_36 = arith.constant dense<0.000000e+00> : vector<8x128xf32>
    %116 = tpu.matmul %114, %115, %cst_36 {dimension_numbers = #tpu.dot_dimension_numbers<[1], [0], [0], [1], [0, 0, 1, 1], [], []>} : vector<8x128xbf16>, vector<128x128xbf16>, vector<8x128xf32> -> vector<8x128xf32>
    %117 = tpu.reciprocal %112 {approx = true} : vector<1x128xf32> -> vector<1x128xf32>
    %118 = vector.broadcast %117 : vector<1x128xf32> to vector<8x128xf32>
    %119 = arith.mulf %116, %118 : vector<8x128xf32>
    %c1 = arith.constant 1 : index
    %c0_37 = arith.constant 0 : index
    %c0_38 = arith.constant 0 : index
    %120 = vector.load %arg5[%c1, %c0_37, %c0_38] : memref<2x32x128xf32, #tpu.memory_space<vmem>>, vector<1x8x128xf32>
    %121 = vector.shape_cast %120 : vector<1x8x128xf32> to vector<8x128xf32>
    %122 = vector.shape_cast %119 : vector<8x128xf32> to vector<1x8x128xf32>
    tpu.vector_store %arg5[%c1, %c0_37, %c0_38], %122 {strides = array<i32>} : memref<2x32x128xf32, #tpu.memory_space<vmem>>, vector<1x8x128xf32>,
    %123 = vector.extract_strided_slice %7 {offsets = [16, 128], sizes = [16, 128], strides = [1, 1]} : vector<96x256xf32> to vector<16x128xf32>
    %124 = arith.truncf %123 : vector<16x128xf32> to vector<16x128xbf16>
    %125 = vector.extract_strided_slice %124 {offsets = [8, 0], sizes = [8, 128], strides = [1, 1]} : vector<16x128xbf16> to vector<8x128xbf16>
    %126 = vector.extract_strided_slice %4 {offsets = [8, 0], sizes = [8, 128], strides = [1, 1]} : vector<32x128xbf16> to vector<8x128xbf16>
    %127 = tpu.concatenate %125, %126 in 0 : vector<8x128xbf16>, vector<8x128xbf16> -> vector<16x128xbf16>
    %cst_39 = arith.constant dense<0.000000e+00> : vector<128x128xf32>
    %128 = tpu.matmul %124, %127, %cst_39 {dimension_numbers = #tpu.dot_dimension_numbers<[0], [0], [1], [1], [0, 1, 1, 1], [], []>} : vector<16x128xbf16>, vector<16x128xbf16>, vector<128x128xf32> -> vector<128x128xf32>
    %cst_40 = arith.constant dense<0xFF800000> : vector<128xf32>
    %129 = vector.multi_reduction <maximumf>, %128, %cst_40 [0] : vector<128x128xf32> to vector<128xf32>
    %130 = vector.shape_cast %129 : vector<128xf32> to vector<1x128xf32>
    %131 = vector.broadcast %130 : vector<1x128xf32> to vector<128x128xf32>
    %132 = arith.subf %128, %131 : vector<128x128xf32>
    %133 = math.exp %132 : vector<128x128xf32>
    %cst_41 = arith.constant dense<0.000000e+00> : vector<128xf32>
    %134 = vector.multi_reduction <add>, %133, %cst_41 [0] : vector<128x128xf32> to vector<128xf32>
    %135 = vector.shape_cast %134 : vector<128xf32> to vector<1x128xf32>
    %136 = vector.extract_strided_slice %7 {offsets = [72, 128], sizes = [8, 128], strides = [1, 1]} : vector<96x256xf32> to vector<8x128xf32>
    %137 = arith.truncf %136 : vector<8x128xf32> to vector<8x128xbf16>
    %138 = arith.truncf %133 : vector<128x128xf32> to vector<128x128xbf16>
    %cst_42 = arith.constant dense<0.000000e+00> : vector<8x128xf32>
    %139 = tpu.matmul %137, %138, %cst_42 {dimension_numbers = #tpu.dot_dimension_numbers<[1], [0], [0], [1], [0, 0, 1, 1], [], []>} : vector<8x128xbf16>, vector<128x128xbf16>, vector<8x128xf32> -> vector<8x128xf32>
    %140 = tpu.reciprocal %135 {approx = true} : vector<1x128xf32> -> vector<1x128xf32>
    %141 = vector.broadcast %140 : vector<1x128xf32> to vector<8x128xf32>
    %142 = arith.mulf %139, %141 : vector<8x128xf32>
    %c1_43 = arith.constant 1 : index
    %c8_44 = arith.constant 8 : index
    %c0_45 = arith.constant 0 : index
    %143 = vector.load %arg5[%c1_43, %c8_44, %c0_45] : memref<2x32x128xf32, #tpu.memory_space<vmem>>, vector<1x8x128xf32>
    %144 = vector.shape_cast %143 : vector<1x8x128xf32> to vector<8x128xf32>
    %145 = vector.shape_cast %142 : vector<8x128xf32> to vector<1x8x128xf32>
    tpu.vector_store %arg5[%c1_43, %c8_44, %c0_45], %145 {strides = array<i32>} : memref<2x32x128xf32, #tpu.memory_space<vmem>>, vector<1x8x128xf32>,
    %146 = vector.extract_strided_slice %7 {offsets = [32, 128], sizes = [16, 128], strides = [1, 1]} : vector<96x256xf32> to vector<16x128xf32>
    %147 = arith.truncf %146 : vector<16x128xf32> to vector<16x128xbf16>
    %148 = vector.extract_strided_slice %147 {offsets = [8, 0], sizes = [8, 128], strides = [1, 1]} : vector<16x128xbf16> to vector<8x128xbf16>
    %149 = vector.extract_strided_slice %4 {offsets = [16, 0], sizes = [8, 128], strides = [1, 1]} : vector<32x128xbf16> to vector<8x128xbf16>
    %150 = tpu.concatenate %148, %149 in 0 : vector<8x128xbf16>, vector<8x128xbf16> -> vector<16x128xbf16>
    %cst_46 = arith.constant dense<0.000000e+00> : vector<128x128xf32>
    %151 = tpu.matmul %147, %150, %cst_46 {dimension_numbers = #tpu.dot_dimension_numbers<[0], [0], [1], [1], [0, 1, 1, 1], [], []>} : vector<16x128xbf16>, vector<16x128xbf16>, vector<128x128xf32> -> vector<128x128xf32>
    %cst_47 = arith.constant dense<0xFF800000> : vector<128xf32>
    %152 = vector.multi_reduction <maximumf>, %151, %cst_47 [0] : vector<128x128xf32> to vector<128xf32>
    %153 = vector.shape_cast %152 : vector<128xf32> to vector<1x128xf32>
    %154 = vector.broadcast %153 : vector<1x128xf32> to vector<128x128xf32>
    %155 = arith.subf %151, %154 : vector<128x128xf32>
    %156 = math.exp %155 : vector<128x128xf32>
    %cst_48 = arith.constant dense<0.000000e+00> : vector<128xf32>
    %157 = vector.multi_reduction <add>, %156, %cst_48 [0] : vector<128x128xf32> to vector<128xf32>
    %158 = vector.shape_cast %157 : vector<128xf32> to vector<1x128xf32>
    %159 = vector.extract_strided_slice %7 {offsets = [80, 128], sizes = [8, 128], strides = [1, 1]} : vector<96x256xf32> to vector<8x128xf32>
    %160 = arith.truncf %159 : vector<8x128xf32> to vector<8x128xbf16>
    %161 = arith.truncf %156 : vector<128x128xf32> to vector<128x128xbf16>
    %cst_49 = arith.constant dense<0.000000e+00> : vector<8x128xf32>
    %162 = tpu.matmul %160, %161, %cst_49 {dimension_numbers = #tpu.dot_dimension_numbers<[1], [0], [0], [1], [0, 0, 1, 1], [], []>} : vector<8x128xbf16>, vector<128x128xbf16>, vector<8x128xf32> -> vector<8x128xf32>
    %163 = tpu.reciprocal %158 {approx = true} : vector<1x128xf32> -> vector<1x128xf32>
    %164 = vector.broadcast %163 : vector<1x128xf32> to vector<8x128xf32>
    %165 = arith.mulf %162, %164 : vector<8x128xf32>
    %c1_50 = arith.constant 1 : index
    %c16_51 = arith.constant 16 : index
    %c0_52 = arith.constant 0 : index
    %166 = vector.load %arg5[%c1_50, %c16_51, %c0_52] : memref<2x32x128xf32, #tpu.memory_space<vmem>>, vector<1x8x128xf32>
    %167 = vector.shape_cast %166 : vector<1x8x128xf32> to vector<8x128xf32>
    %168 = vector.shape_cast %165 : vector<8x128xf32> to vector<1x8x128xf32>
    tpu.vector_store %arg5[%c1_50, %c16_51, %c0_52], %168 {strides = array<i32>} : memref<2x32x128xf32, #tpu.memory_space<vmem>>, vector<1x8x128xf32>,
    %169 = vector.extract_strided_slice %7 {offsets = [48, 128], sizes = [16, 128], strides = [1, 1]} : vector<96x256xf32> to vector<16x128xf32>
    %170 = arith.truncf %169 : vector<16x128xf32> to vector<16x128xbf16>
    %171 = vector.extract_strided_slice %170 {offsets = [8, 0], sizes = [8, 128], strides = [1, 1]} : vector<16x128xbf16> to vector<8x128xbf16>
    %172 = vector.extract_strided_slice %4 {offsets = [24, 0], sizes = [8, 128], strides = [1, 1]} : vector<32x128xbf16> to vector<8x128xbf16>
    %173 = tpu.concatenate %171, %172 in 0 : vector<8x128xbf16>, vector<8x128xbf16> -> vector<16x128xbf16>
    %cst_53 = arith.constant dense<0.000000e+00> : vector<128x128xf32>
    %174 = tpu.matmul %170, %173, %cst_53 {dimension_numbers = #tpu.dot_dimension_numbers<[0], [0], [1], [1], [0, 1, 1, 1], [], []>} : vector<16x128xbf16>, vector<16x128xbf16>, vector<128x128xf32> -> vector<128x128xf32>
    %cst_54 = arith.constant dense<0xFF800000> : vector<128xf32>
    %175 = vector.multi_reduction <maximumf>, %174, %cst_54 [0] : vector<128x128xf32> to vector<128xf32>
    %176 = vector.shape_cast %175 : vector<128xf32> to vector<1x128xf32>
    %177 = vector.broadcast %176 : vector<1x128xf32> to vector<128x128xf32>
    %178 = arith.subf %174, %177 : vector<128x128xf32>
    %179 = math.exp %178 : vector<128x128xf32>
    %cst_55 = arith.constant dense<0.000000e+00> : vector<128xf32>
    %180 = vector.multi_reduction <add>, %179, %cst_55 [0] : vector<128x128xf32> to vector<128xf32>
    %181 = vector.shape_cast %180 : vector<128xf32> to vector<1x128xf32>
    %182 = vector.extract_strided_slice %7 {offsets = [88, 128], sizes = [8, 128], strides = [1, 1]} : vector<96x256xf32> to vector<8x128xf32>
    %183 = arith.truncf %182 : vector<8x128xf32> to vector<8x128xbf16>
    %184 = arith.truncf %179 : vector<128x128xf32> to vector<128x128xbf16>
    %cst_56 = arith.constant dense<0.000000e+00> : vector<8x128xf32>
    %185 = tpu.matmul %183, %184, %cst_56 {dimension_numbers = #tpu.dot_dimension_numbers<[1], [0], [0], [1], [0, 0, 1, 1], [], []>} : vector<8x128xbf16>, vector<128x128xbf16>, vector<8x128xf32> -> vector<8x128xf32>
    %186 = tpu.reciprocal %181 {approx = true} : vector<1x128xf32> -> vector<1x128xf32>
    %187 = vector.broadcast %186 : vector<1x128xf32> to vector<8x128xf32>
    %188 = arith.mulf %185, %187 : vector<8x128xf32>
    %c1_57 = arith.constant 1 : index
    %c24_58 = arith.constant 24 : index
    %c0_59 = arith.constant 0 : index
    %189 = vector.load %arg5[%c1_57, %c24_58, %c0_59] : memref<2x32x128xf32, #tpu.memory_space<vmem>>, vector<1x8x128xf32>
    %190 = vector.shape_cast %189 : vector<1x8x128xf32> to vector<8x128xf32>
    %191 = vector.shape_cast %188 : vector<8x128xf32> to vector<1x8x128xf32>
    tpu.vector_store %arg5[%c1_57, %c24_58, %c0_59], %191 {strides = array<i32>} : memref<2x32x128xf32, #tpu.memory_space<vmem>>, vector<1x8x128xf32>,
    return
  }
  func.func @transform_0(%arg0: i32) -> (i32, i32, i32) {
    %c0_i32 = arith.constant 0 : i32
    %c0_i32_0 = arith.constant 0 : i32
    %c0_i32_1 = arith.constant 0 : i32
    return %arg0, %c0_i32, %c0_i32_0 : i32, i32, i32
  }
  func.func @transform_1(%arg0: i32) -> (i32, i32) {
    %c0_i32 = arith.constant 0 : i32
    %c0_i32_0 = arith.constant 0 : i32
    %c0_i32_1 = arith.constant 0 : i32
    return %c0_i32, %c0_i32_0 : i32, i32
  }
  func.func @transform_2(%arg0: i32) -> (i32, i32) {
    %c0_i32 = arith.constant 0 : i32
    %c0_i32_0 = arith.constant 0 : i32
    %c0_i32_1 = arith.constant 0 : i32
    return %c0_i32, %c0_i32_0 : i32, i32
  }
  func.func @transform_3(%arg0: i32) -> (i32, i32) {
    %c0_i32 = arith.constant 0 : i32
    %c0_i32_0 = arith.constant 0 : i32
    %c0_i32_1 = arith.constant 0 : i32
    return %c0_i32, %c0_i32_0 : i32, i32
  }
  func.func @transform_4(%arg0: i32) -> (i32, i32, i32) {
    %c0_i32 = arith.constant 0 : i32
    %c0_i32_0 = arith.constant 0 : i32
    %c0_i32_1 = arith.constant 0 : i32
    return %arg0, %c0_i32, %c0_i32_0 : i32, i32, i32
  }
}

</mosaic_0001>

<bundles_post_ra>
// kernel: tpu_custom_call.1
= control target key start
LH: loop header
LB: loop body
LE: loop exit
PB: predicated region body
PF: predicated region fallthrough
CT: control target
= control target key end

     0   :  { %v3442_v2 = vmov 0   ;;  %vm161_vm0 = vcmask 261120   ;;  %s3928_s0 = inlined_call_operand.vmem [shape: bf16[1,32,256], index: 0, kind: input, shape index: {}]   ;;  %s3929_s1 = inlined_call_operand.vmem [shape: bf16[96,32], index: 1, kind: input, shape index: {}]   ;;  %s3930_s2 = inlined_call_operand.vmem [shape: f32[96,1], index: 2, kind: input, shape index: {}]   ;;  %s3931_s3 = inlined_call_operand.vmem [shape: bf16[32,128], index: 3, kind: input, shape index: {}]   ;;  %s3932_s4 = inlined_call_operand.hbm [shape: f32[2,32,128], index: 4, kind: output, shape index: {}]  }
   0x1   :  { %v3128_v0 = vld [vmem:[%s3928_s0 + $0x14] ss:$8 sps:$4 sm:$0xff]   ;;  %v3130_v1 = vld [vmem:[%s3928_s0 + $0x10] ss:$8 sps:$4 sm:$0xff]   ;;  %212 = vmatprep.mubr.bf16.mxu0 %v3442_v2  ;;  %3126 = vset.pattern.permute.xlu0 %v3442_v2  ;;  %v3131_v3 = vld [vmem:[%s3928_s0 + $0x4] ss:$8 sps:$4 sm:$0xff]  }
   0x2   :  { %192 = vmatprep.subr.bf16.mxu0 %v3128_v0  ;;  %v3133_v4 = vld [vmem:[%s3928_s0] ss:$8 sps:$4 sm:$0xff]  }
   0x3   :  { %193 = vmatpush1.bf16.msra.mxu0 %v3130_v1  ;;  %v3134_v5 = vld [vmem:[%s3929_s1] sm:$0xff]   ;;  %v36_v7 = vld [vmem:[%s3930_s2 + $0x8] sm:$0xff] }
   0x4   :  { %194 = vmatprep.subr.bf16.mxu0 %v3131_v3  ;;  %v35_v6 = vld [vmem:[%s3930_s2] sm:$0xff] }
   0x5   :  { %53 = vperm.xlu0 %3126, %v35_v6  }
   0x7   :  { %195 = vmatpush1.bf16.msra.mxu0 %v3133_v4 }
   0xa   :  { %2598 = vmatmul.mubr.msk.bf16.vlgmr.msra.gmra.mxu0 %vm161_vm0, %v3134_v5 }
   0xb   :  { %222 = vmatprep.mubr.bf16.mxu0 %v3442_v2 }
   0xc   :  { %9 = vsyncpa [#allocation3], 0  ;;  %58 = vperm.xlu0 %3126, %v36_v7   ;;  %v38_v8 = vld [vmem:[%s3930_s2 + $0x18] sm:$0xff]  ;;  %v3135_v9 = vld [vmem:[%s3929_s1 + $0x8] sm:$0xff]   ;;  %vm279_vm1 = vcmask 1043456   ;;  %vm300_vm2 = vcmask 130048  }
   0xd   :  { %v43_v10 = vld [vmem:[%s3930_s2 + $0x40] sm:$0xff]  ;;  %v3136_v11 = vld [vmem:[%s3929_s1 + $0x10] sm:$0xff]   ;;  %v3137_v12 = vld [vmem:[%s3929_s1 + $0x18] sm:$0xff]   ;;  %vm3444_vm3 = vmmov 0  }
   0xe   :  { %v3138_v13 = vld [vmem:[%s3929_s1 + $0x20] sm:$0xff]   ;;  %v3140_v14 = vld [vmem:[%s3929_s1 + $0x28] sm:$0xff]   ;;  %v37_v26 = vld [vmem:[%s3930_s2 + $0x10] sm:$0xff] }
   0xf   :  { %v3139_v23 = vld [vmem:[%s3931_s3] ss:$0 sps:$4 sm:$0xff]   ;;  %v40_v28 = vld [vmem:[%s3930_s2 + $0x28] sm:$0xff]  ;;  %v41_v30 = vld [vmem:[%s3930_s2 + $0x30] sm:$0xff] }
  0x10   :  { %68 = vperm.xlu0 %3126, %v38_v8   ;;  %v39_v27 = vld [vmem:[%s3930_s2 + $0x20] sm:$0xff]  ;;  %v44_v29 = vld [vmem:[%s3930_s2 + $0x48] sm:$0xff]  ;;  %v42_v31 = vld [vmem:[%s3930_s2 + $0x38] sm:$0xff] }
  0x11   :  { %v45_v32 = vld [vmem:[%s3930_s2 + $0x50] sm:$0xff] }
  0x12   :  { %2599 = vmatmul.mubr.msk.bf16.gmra.mxu0 %vm161_vm0, %v3135_v9 }
  0x13   :  { %232 = vmatprep.mubr.bf16.mxu0 %v3442_v2 }
  0x14   :  { %93 = vperm.xlu0 %3126, %v43_v10  }
  0x1a   :  { %2600 = vmatmul.mubr.msk.bf16.gmra.mxu0 %vm161_vm0, %v3136_v11 }
  0x1b   :  { %242 = vmatprep.mubr.bf16.mxu0 %v3442_v2 }
  0x22   :  { %2601 = vmatmul.mubr.msk.bf16.gmra.mxu0 %vm161_vm0, %v3137_v12 }
  0x23   :  { %252 = vmatprep.mubr.bf16.mxu0 %v3442_v2 }
  0x2a   :  { %2602 = vmatmul.mubr.msk.bf16.gmra.mxu0 %vm161_vm0, %v3138_v13 }
  0x2b   :  { %262 = vmatprep.mubr.bf16.mxu0 %v3442_v2 }
  0x32   :  { %2603 = vmatmul.mubr.msk.bf16.gmra.mxu0 %vm161_vm0, %v3140_v14 }
  0x80   :  { %v3521_v15 = vpop.permute.xlu0 %53 }
  0x87   :  { %v3525_v18 = vpop.permute.xlu0 %58 }
  0x8b   :  { %v69_v54 = vpop.permute.xlu0 %68 }
  0xca   :  { %v214_v16 = vpop.f32.mrf.mxu0 }
  0xcb   :  { %v215_v20 = vadd.f32 %v214_v16, %v3521_v15 }
  0xcc   :  { %v3523_v17 = vpop.f32.mrf.mxu0 }
  0xce   :  { %v218_v19 = vpop.f32.mrf.mxu0 }
  0xcf   :  { %v219_v21 = vadd.f32 %v218_v19, %v3525_v18 }
  0xd0   :  { %v220_v35 = vpop.f32.mrf.mxu0 }
  0xd1   :  { %v273_v22 = vpack.c.bf16 %v219_v21, %v215_v20 }
  0xd2   :  { %v224_v37 = vpop.f32.mrf.mxu0 }
  0xd3   :  { %284 = vxpose.xlu1.c.b16.start.end [1/1] (short) %v273_v22, 128  ;;  %v275_v24 = vrot.slane %v273_v22, 4 }
  0xd4   :  { %v226_v39 = vpop.f32.mrf.mxu0 }
  0xd5   :  { %v282_v25 = vsel %vm279_vm1, %v275_v24, %v3139_v23  ;;  %v221_v23 = vadd.f32 %v220_v35, %v3525_v18  ;;  %v217_v24 = vadd.f32 %v3523_v17, %v3521_v15 }
  0xd6   :  { %2816 = vmatprep.subr.bf16.mxu1 %v282_v25  ;;  %v228_v41 = vpop.f32.mrf.mxu0 }
  0xd7   :  { %2817 = vmatpush3.bf16.msra.mxu1 %v282_v25  ;;  %3127 = vset.pattern.permute.xlu1 %v3442_v2  ;;  %v229_v56 = vadd.f32 %v228_v41, %v69_v54  ;;  %v3591_v25 = vpack.c.bf16 %v221_v23, %v217_v24 }
  0xd8   :  { %v230_v43 = vpop.f32.mrf.mxu0 }
  0xd9   :  { %v231_v57 = vadd.f32 %v230_v43, %v69_v54 }
  0xda   :  { %v234_v45 = vpop.f32.mrf.mxu0 }
  0xdc   :  { %v236_v47 = vpop.f32.mrf.mxu0 }
  0xde   :  { %v238_v48 = vpop.f32.mrf.mxu0 }
  0xe0   :  { %v240_v49 = vpop.f32.mrf.mxu0 }
  0xe2   :  { %v244_v50 = vpop.f32.mrf.mxu0 }
  0xe4   :  { %v246_v51 = vpop.f32.mrf.mxu0 }
  0xe6   :  { %v248_v52 = vpop.f32.mrf.mxu0 }
  0xe8   :  { %v250_v53 = vpop.f32.mrf.mxu0 }
  0xea   :  { %v3562_v60 = vpop.f32.mrf.mxu0 }
  0xec   :  { %v3569_v0 = vpop.f32.mrf.mxu0 }
  0xee   :  { %v3571_v3 = vpop.f32.mrf.mxu0 }
  0xf0   :  { %v260_v7 = vpop.f32.mrf.mxu0 }
  0xf3   :  { %63 = vperm.xlu1 %3127, %v37_v26   ;;  %v46_v26 = vld [vmem:[%s3930_s2 + $0x58] sm:$0xff] }
  0xf7   :  { %73 = vperm.xlu1 %3127, %v39_v27   ;;  %v3443_v27 = vmov 0.0  }
  0xf8   :  { %2834 = vmatprep.subr.bf16.mxu1 %v3443_v27  ;;  %2872 = vmatprep.subr.bf16.mxu0 %v3443_v27 }
  0xf9   :  { %2888 = vmatprep.mubr.msk.bf16.mxu0 %vm3444_vm3, %v3443_v27 }
  0xfb   :  { %78 = vperm.xlu1 %3127, %v40_v28  }
  0xff   :  { %98 = vperm.xlu1 %3127, %v44_v29  }
 0x103   :  { %83 = vperm.xlu1 %3127, %v41_v30  }
 0x107   :  { %88 = vperm.xlu1 %3127, %v42_v31  }
 0x10b   :  { %103 = vperm.xlu1 %3127, %v45_v32  }
 0x135   :  { %v292_v33 = vpop.trf.xlu1 }
 0x136   :  { %2818 = vmatprep.mubr.msk.bf16.mxu1 %vm300_vm2, %v292_v33 }
 0x139   :  { %v293_v34 = vpop.trf.xlu1 }
 0x13a   :  { %2819 = vmatmul.mubr.msk.bf16.vlgmr.msra.gmra.mxu1 %vm300_vm2, %v293_v34 }
 0x13d   :  { %v294_v36 = vpop.trf.xlu1 }
 0x13e   :  { %2822 = vmatprep.mubr.msk.bf16.mxu1 %vm300_vm2, %v294_v36 }
 0x141   :  { %v295_v38 = vpop.trf.xlu1 }
 0x142   :  { %2823 = vmatmul.mubr.msk.bf16.gmra.mxu1 %vm300_vm2, %v295_v38 }
 0x145   :  { %v296_v40 = vpop.trf.xlu1 }
 0x146   :  { %2826 = vmatprep.mubr.msk.bf16.mxu1 %vm300_vm2, %v296_v40 }
 0x149   :  { %v297_v42 = vpop.trf.xlu1 }
 0x14a   :  { %2827 = vmatmul.mubr.msk.bf16.gmra.mxu1 %vm300_vm2, %v297_v42 }
 0x14d   :  { %v298_v44 = vpop.trf.xlu1 }
 0x14e   :  { %2830 = vmatprep.mubr.msk.bf16.mxu1 %vm300_vm2, %v298_v44 }
 0x151   :  { %v299_v46 = vpop.trf.xlu1 }
 0x152   :  { %2831 = vmatmul.mubr.msk.bf16.gmra.mxu1 %vm300_vm2, %v299_v46 }
 0x153   :  { %2850 = vmatprep.mubr.msk.bf16.mxu1 %vm3444_vm3, %v3443_v27 }
 0x16e   :  { %v64_v55 = vpop.permute.xlu1 %63 }
 0x16f   :  { %v225_v58 = vadd.f32 %v224_v37, %v64_v55  ;;  %v227_v59 = vadd.f32 %v226_v39, %v64_v55 }
 0x171   :  { %v3564_v61 = vpack.c.bf16 %v229_v56, %v225_v58  ;;  %v3566_v62 = vpack.c.bf16 %v231_v57, %v227_v59 }
 0x172   :  { %v74_v63 = vpop.permute.xlu1 %73 }
 0x173   :  { %574 = vxpose.xlu0.c.b16.start.end [1/1] (short) %v3564_v61, 128  ;;  %v237_v1 = vadd.f32 %v236_v47, %v74_v63  ;;  %v235_v20 = vadd.f32 %v234_v45, %v74_v63 }
 0x176   :  { %v79_v2 = vpop.permute.xlu1 %78 }
 0x177   :  { %v241_v4 = vadd.f32 %v240_v49, %v79_v2  ;;  %v239_v21 = vadd.f32 %v238_v48, %v79_v2 }
 0x179   :  { %v3573_v5 = vpack.c.bf16 %v241_v4, %v237_v1  ;;  %v3585_v22 = vpack.c.bf16 %v239_v21, %v235_v20 }
 0x17a   :  { %v3575_v6 = vpop.permute.xlu1 %98 }
 0x17b   :  { %v3578_v8 = vadd.f32 %v260_v7, %v3575_v6 }
 0x17e   :  { %v84_v9 = vpop.permute.xlu1 %83 }
 0x17f   :  { %v245_v10 = vadd.f32 %v244_v50, %v84_v9  ;;  %v247_v11 = vadd.f32 %v246_v51, %v84_v9 }
 0x182   :  { %v89_v12 = vpop.permute.xlu1 %88 }
 0x183   :  { %v249_v13 = vadd.f32 %v248_v52, %v89_v12  ;;  %v251_v14 = vadd.f32 %v250_v53, %v89_v12 }
 0x185   :  { %v3580_v16 = vpack.c.bf16 %v249_v13, %v245_v10  ;;  %v3582_v19 = vpack.c.bf16 %v251_v14, %v247_v11 }
 0x187   :  { %1152 = vxpose.xlu1.c.b16.start.end [1/1] (short) %v3580_v16, 128 }
 0x190   :  { %863 = vxpose.xlu0.c.b16.start.end [1/1] (short) %v3585_v22, 128 }
 0x1a4   :  { %1437 = vxpose.xlu1.c.b16.start.end [1/1] (short) %v3591_v25, 128 }
 0x1b5   :  { %108 = vperm.xlu0 %3126, %v46_v26  }
 0x1c1   :  { %2008 = vxpose.xlu1.c.b16.start.end [1/1] (short) %v3573_v5, 128 }
 0x1d3   :  { %1723 = vxpose.xlu0.c.b16.start.end [1/1] (short) %v3566_v62, 128 }
 0x1f0   :  { %2293 = vxpose.xlu0.c.b16.start.end [1/1] (short) %v3582_v19, 128 }
 0x1fa   :  { %v2820_v15 = vpop.f32.mrf.mxu1 }
 0x1fc   :  { %v359_v17 = vpop.f32.mrf.mxu1 }
 0x1fe   :  { %v2821_v18 = vpop.f32.mrf.mxu1 }
 0x200   :  { %v362_v28 = vpop.f32.mrf.mxu1 }
 0x202   :  { %v2824_v29 = vpop.f32.mrf.mxu1 }
 0x203   :  { %v424_v40 = vmax.f32 %v2820_v15, %v2824_v29 }
 0x204   :  { %v375_v30 = vpop.f32.mrf.mxu1 }
 0x205   :  { %v422_v41 = vmax.f32 %v359_v17, %v375_v30 }
 0x206   :  { %v2825_v31 = vpop.f32.mrf.mxu1 }
 0x207   :  { %v425_v38 = vmax.f32 %v2821_v18, %v2825_v31 }
 0x208   :  { %v378_v32 = vpop.f32.mrf.mxu1 }
 0x209   :  { %v423_v42 = vmax.f32 %v362_v28, %v378_v32 }
 0x20a   :  { %v3606_v33 = vpop.f32.mrf.mxu1 }
 0x20b   :  { %v428_v45 = vmax.f32 %v424_v40, %v3606_v33 }
 0x20c   :  { %v391_v34 = vpop.f32.mrf.mxu1 }
 0x20d   :  { %v426_v46 = vmax.f32 %v422_v41, %v391_v34 }
 0x20e   :  { %v3608_v35 = vpop.f32.mrf.mxu1 }
 0x20f   :  { %v429_v43 = vmax.f32 %v425_v38, %v3608_v35 }
 0x210   :  { %v394_v36 = vpop.f32.mrf.mxu1 }
 0x211   :  { %v427_v47 = vmax.f32 %v423_v42, %v394_v36 }
 0x212   :  { %v2832_v37 = vpop.f32.mrf.mxu1 }
 0x213   :  { %v432_v50 = vmax.f32 %v428_v45, %v2832_v37 }
 0x214   :  { %v407_v39 = vpop.f32.mrf.mxu1 }
 0x215   :  { %v430_v51 = vmax.f32 %v426_v46, %v407_v39 }
 0x216   :  { %v2833_v44 = vpop.f32.mrf.mxu1 }
 0x217   :  { %v433_v48 = vmax.f32 %v429_v43, %v2833_v44 }
 0x218   :  { %v410_v49 = vpop.f32.mrf.mxu1 }
 0x219   :  { %v431_v52 = vmax.f32 %v427_v47, %v410_v49  ;;  %v435_v53 = vmax.f32 %v432_v50, %v433_v48 }
 0x21b   :  { %v434_v54 = vmax.f32 %v430_v51, %v431_v52 }
 0x21d   :  { %v436_v55 = vmax.f32 %v434_v54, %v435_v53 }
 0x21f   :  { %v437_v56 = vrot.slane %v436_v55, 4 }
 0x221   :  { %v438_v57 = vmax.f32 %v436_v55, %v437_v56 }
 0x223   :  { %v439_v58 = vrot.slane %v438_v57, 2 }
 0x225   :  { %v440_v59 = vmax.f32 %v438_v57, %v439_v58 }
 0x227   :  { %v441_v63 = vrot.slane %v440_v59, 1 }
 0x229   :  { %v442_v1 = vmax.f32 %v440_v59, %v441_v63 }
 0x22b   :  { %v443_v2 = vsub.f32 %v359_v17, %v442_v1  ;;  %v444_v4 = vsub.f32 %v362_v28, %v442_v1  ;;  %v445_v7 = vsub.f32 %v2820_v15, %v442_v1  ;;  %v446_v9 = vsub.f32 %v2821_v18, %v442_v1 }
 0x22c   :  { %v447_v13 = vsub.f32 %v375_v30, %v442_v1  ;;  %v448_v20 = vsub.f32 %v378_v32, %v442_v1  ;;  %v449_v21 = vsub.f32 %v2824_v29, %v442_v1  ;;  %v450_v23 = vsub.f32 %v2825_v31, %v442_v1 }
 0x22d   :  { %v459_v10 = vmul.f32 1.442695, %v443_v2  ;;  %v461_v11 = vmul.f32 1.442695, %v444_v4  ;;  %v463_v12 = vmul.f32 1.442695, %v445_v7  ;;  %v451_v26 = vsub.f32 %v391_v34, %v442_v1 }
 0x22e   :  { %v465_v14 = vmul.f32 1.442695, %v446_v9  ;;  %v467_v24 = vmul.f32 1.442695, %v447_v13  ;;  %v452_v38 = vsub.f32 %v394_v36, %v442_v1  ;;  %v469_v40 = vmul.f32 1.442695, %v448_v20 }
 0x22f   :  { %3144 = vpow2.f32 %v459_v10  ;;  %v457_v17 = vsub.f32 %v2832_v37, %v442_v1  ;;  %v471_v28 = vmul.f32 1.442695, %v449_v21  ;;  %v458_v15 = vsub.f32 %v2833_v44, %v442_v1 }
 0x230   :  { %3146 = vpow2.f32 %v461_v11  ;;  %v473_v18 = vmul.f32 1.442695, %v450_v23  ;;  %v455_v41 = vsub.f32 %v407_v39, %v442_v1  ;;  %v475_v42 = vmul.f32 1.442695, %v451_v26 }
 0x231   :  { %3148 = vpow2.f32 %v463_v12  ;;  %v456_v30 = vsub.f32 %v410_v49, %v442_v1  ;;  %v477_v43 = vmul.f32 1.442695, %v452_v38  ;;  %v487_v32 = vmul.f32 1.442695, %v457_v17 }
 0x232   :  { %3150 = vpow2.f32 %v465_v14  ;;  %v453_v29 = vsub.f32 %v3606_v33, %v442_v1  ;;  %v489_v31 = vmul.f32 1.442695, %v458_v15  ;;  %v483_v34 = vmul.f32 1.442695, %v455_v41 }
 0x233   :  { %3152 = vpow2.f32 %v467_v24  ;;  %v454_v37 = vsub.f32 %v3608_v35, %v442_v1  ;;  %v485_v44 = vmul.f32 1.442695, %v456_v30  ;;  %v566_v30 = vrot.slane %v3564_v61, 4 }
 0x234   :  { %3154 = vpow2.f32 %v469_v40  ;;  %v479_v46 = vmul.f32 1.442695, %v453_v29 }
 0x235   :  { %3156 = vpow2.f32 %v471_v28  ;;  %v481_v49 = vmul.f32 1.442695, %v454_v37 }
 0x236   :  { %3158 = vpow2.f32 %v473_v18  ;;  %v3626_v18 = vpop.permute.xlu0 %93 }
 0x237   :  { %3160 = vpow2.f32 %v475_v42 }
 0x238   :  { %3162 = vpow2.f32 %v477_v43  ;;  %v3141_v43 = vld [vmem:[%s3931_s3 + $0x4] ss:$0 sps:$4 sm:$0xff]  }
 0x239   :  { %3164 = vpow2.f32 %v487_v32  ;;  %v255_v32 = vadd.f32 %v3562_v60, %v3626_v18 }
 0x23a   :  { %3166 = vpow2.f32 %v489_v31  ;;  %v582_v42 = vpop.trf.xlu0  ;;  %v572_v31 = vsel %vm279_vm1, %v566_v30, %v3141_v43 }
 0x23b   :  { %3168 = vpow2.f32 %v483_v34  ;;  %v512_v34 = vpack.c.bf16 %v255_v32, %v255_v32 }
 0x23c   :  { %v3613_v36 = vpop.eup %3144  ;;  %3170 = vpow2.f32 %v485_v44 }
 0x23d   :  { %v3616_v45 = vpop.eup %3146  ;;  %3172 = vpow2.f32 %v479_v46 }
 0x23e   :  { %v3149_v39 = vpop.eup %3148  ;;  %v491_v47 = vadd.f32 %v3616_v45, %v3613_v36  ;;  %v513_v33 = vpack.c.bf16 %v3616_v45, %v3613_v36  ;;  %3174 = vpow2.f32 %v481_v49  ;;  %v583_v29 = vpop.trf.xlu0 }
 0x23f   :  { %v3151_v48 = vpop.eup %3150 }
 0x240   :  { %v492_v50 = vadd.f32 %v3149_v39, %v491_v47  ;;  %v514_v35 = vpack.c.bf16 %v3151_v48, %v3149_v39  ;;  %v3153_v52 = vpop.eup %3152 }
 0x241   :  { %v3155_v54 = vpop.eup %3154 }
 0x242   :  { %v493_v51 = vadd.f32 %v3151_v48, %v492_v50  ;;  %v3157_v55 = vpop.eup %3156  ;;  %v515_v41 = vpack.c.bf16 %v3155_v54, %v3153_v52  ;;  %v584_v36 = vpop.trf.xlu0 }
 0x243   :  { %v3159_v57 = vpop.eup %3158 }
 0x244   :  { %v494_v53 = vadd.f32 %v3153_v52, %v493_v51  ;;  %v3161_v58 = vpop.eup %3160  ;;  %v516_v15 = vpack.c.bf16 %v3159_v57, %v3157_v55 }
 0x245   :  { %v3163_v63 = vpop.eup %3162 }
 0x246   :  { %v495_v56 = vadd.f32 %v3155_v54, %v494_v53  ;;  %v3165_v1 = vpop.eup %3164  ;;  %v517_v17 = vpack.c.bf16 %v3163_v63, %v3161_v58  ;;  %v585_v61 = vpop.trf.xlu0 }
 0x247   :  { %v3167_v4 = vpop.eup %3166 }
 0x248   :  { %v496_v59 = vadd.f32 %v3157_v55, %v495_v56  ;;  %v3169_v7 = vpop.eup %3168  ;;  %v520_v10 = vpack.c.bf16 %v3167_v4, %v3165_v1 }
 0x249   :  { %v3171_v11 = vpop.eup %3170 }
 0x24a   :  { %v497_v2 = vadd.f32 %v3159_v57, %v496_v59  ;;  %2835 = vmatpush3.bf16.msra.mxu1 %v520_v10  ;;  %v3173_v13 = vpop.eup %3172  ;;  %v519_v20 = vpack.c.bf16 %v3171_v11, %v3169_v7  ;;  %v586_v60 = vpop.trf.xlu0 }
 0x24b   :  { %2836 = vmatprep.subr.bf16.mxu1 %v3443_v27  ;;  %v3175_v21 = vpop.eup %3174 }
 0x24c   :  { %v498_v9 = vadd.f32 %v3161_v58, %v497_v2  ;;  %v518_v26 = vpack.c.bf16 %v3175_v21, %v3173_v13 }
 0x24e   :  { %v499_v12 = vadd.f32 %v3163_v63, %v498_v9  ;;  %2837 = vmatpush3.bf16.msra.mxu1 %v519_v20  ;;  %v587_v37 = vpop.trf.xlu0 }
 0x24f   :  { %2838 = vmatprep.subr.bf16.mxu1 %v3443_v27 }
 0x250   :  { %v500_v14 = vadd.f32 %v3173_v13, %v499_v12 }
 0x252   :  { %v501_v23 = vadd.f32 %v3175_v21, %v500_v14  ;;  %2839 = vmatpush3.bf16.msra.mxu1 %v518_v26  ;;  %v588_v44 = vpop.trf.xlu0 }
 0x253   :  { %2840 = vmatprep.subr.bf16.mxu1 %v3443_v27 }
 0x254   :  { %v502_v24 = vadd.f32 %v3169_v7, %v501_v23 }
 0x256   :  { %v503_v38 = vadd.f32 %v3171_v11, %v502_v24  ;;  %2841 = vmatpush3.bf16.msra.mxu1 %v517_v17  ;;  %v589_v45 = vpop.trf.xlu0 }
 0x257   :  { %2842 = vmatprep.subr.bf16.mxu1 %v3443_v27 }
 0x258   :  { %v504_v40 = vadd.f32 %v3165_v1, %v503_v38 }
 0x25a   :  { %v505_v28 = vadd.f32 %v3167_v4, %v504_v40  ;;  %2843 = vmatpush3.bf16.msra.mxu1 %v516_v15 }
 0x25b   :  { %2844 = vmatprep.subr.bf16.mxu1 %v3443_v27 }
 0x25c   :  { %v506_v39 = vrot.slane %v505_v28, 4 }
 0x25e   :  { %2845 = vmatpush3.bf16.msra.mxu1 %v515_v41  ;;  %v507_v46 = vadd.f32 %v506_v39, %v505_v28 }
 0x25f   :  { %2846 = vmatprep.subr.bf16.mxu1 %v3443_v27 }
 0x260   :  { %v508_v47 = vrot.slane %v507_v46, 2 }
 0x262   :  { %2847 = vmatpush3.bf16.msra.mxu1 %v514_v35 }
 0x263   :  { %2848 = vmatprep.subr.bf16.mxu1 %v3443_v27 }
 0x266   :  { %2849 = vmatpush3.bf16.msra.mxu1 %v513_v33  ;;  %v509_v33 = vadd.f32 %v508_v47, %v507_v46 }
 0x267   :  { %2854 = vmatprep.subr.bf16.mxu1 %v572_v31 }
 0x268   :  { %v510_v48 = vrot.slane %v509_v33, 1 }
 0x269   :  { %2851 = vmatmul.mubr.bf16.vlgmr.msra.gmra.mxu1 %v512_v34 }
 0x26a   :  { %2855 = vmatpush3.bf16.msra.mxu1 %v572_v31  ;;  %2856 = vmatprep.mubr.msk.bf16.mxu1 %vm300_vm2, %v582_v42  ;;  %v511_v49 = vadd.f32 %v510_v48, %v509_v33 }
 0x26b   :  { %2910 = vmatprep.subr.bf16.mxu1 %v3443_v27 }
 0x26c   :  { %3176 = vrcp.f32 %v511_v49 }
 0x271   :  { %2857 = vmatmul.mubr.msk.bf16.vlgmr.msra.gmra.mxu1 %vm300_vm2, %v583_v29 }
 0x272   :  { %2860 = vmatprep.mubr.msk.bf16.mxu1 %vm300_vm2, %v584_v36 }
 0x279   :  { %2861 = vmatmul.mubr.msk.bf16.gmra.mxu1 %vm300_vm2, %v585_v61  ;;  %v3177_v50 = vpop.eup %3176 }
 0x27a   :  { %2864 = vmatprep.mubr.msk.bf16.mxu1 %vm300_vm2, %v586_v60 }
 0x281   :  { %2865 = vmatmul.mubr.msk.bf16.gmra.mxu1 %vm300_vm2, %v587_v37 }
 0x282   :  { %2868 = vmatprep.mubr.msk.bf16.mxu1 %vm300_vm2, %v588_v44 }
 0x289   :  { %2869 = vmatmul.mubr.msk.bf16.gmra.mxu1 %vm300_vm2, %v589_v45 }
 0x28a   :  { %2926 = vmatprep.mubr.msk.bf16.mxu1 %vm3444_vm3, %v3443_v27 }
 0x329   :  { %v555_v35 = vpop.f32.mrf.mxu1 }
 0x32a   :  { %v562_v51 = vmul.f32 %v3177_v50, %v555_v35 }
 0x32b   :  { %v2852_v52 = vpop.f32.mrf.mxu1 }
 0x32c   :  { %563 = vst [vmem:[#allocation2] sm:$0xff] %v562_v51 }
 0x32d   :  { %v558_v53 = vpop.f32.mrf.mxu1 }
 0x32f   :  { %v2853_v54 = vpop.f32.mrf.mxu1 }
 0x331   :  { %v2858_v55 = vpop.f32.mrf.mxu1 }
 0x333   :  { %v648_v56 = vpop.f32.mrf.mxu1 }
 0x335   :  { %v2859_v57 = vpop.f32.mrf.mxu1 }
 0x337   :  { %v651_v58 = vpop.f32.mrf.mxu1 }
 0x339   :  { %v2862_v59 = vpop.f32.mrf.mxu1 }
 0x33a   :  { %v713_v14 = vmax.f32 %v2858_v55, %v2862_v59 }
 0x33b   :  { %v664_v63 = vpop.f32.mrf.mxu1 }
 0x33c   :  { %v711_v20 = vmax.f32 %v648_v56, %v664_v63 }
 0x33d   :  { %v2863_v1 = vpop.f32.mrf.mxu1 }
 0x33e   :  { %v714_v12 = vmax.f32 %v2859_v57, %v2863_v1 }
 0x33f   :  { %v667_v2 = vpop.f32.mrf.mxu1 }
 0x340   :  { %v712_v21 = vmax.f32 %v651_v58, %v667_v2 }
 0x341   :  { %v3649_v4 = vpop.f32.mrf.mxu1 }
 0x342   :  { %v717_v26 = vmax.f32 %v713_v14, %v3649_v4 }
 0x343   :  { %v680_v7 = vpop.f32.mrf.mxu1 }
 0x344   :  { %v715_v38 = vmax.f32 %v711_v20, %v680_v7 }
 0x345   :  { %v3651_v9 = vpop.f32.mrf.mxu1 }
 0x346   :  { %v718_v23 = vmax.f32 %v714_v12, %v3651_v9 }
 0x347   :  { %v683_v10 = vpop.f32.mrf.mxu1 }
 0x348   :  { %v716_v40 = vmax.f32 %v712_v21, %v683_v10 }
 0x349   :  { %v2870_v11 = vpop.f32.mrf.mxu1 }
 0x34a   :  { %v721_v15 = vmax.f32 %v717_v26, %v2870_v11 }
 0x34b   :  { %v696_v13 = vpop.f32.mrf.mxu1 }
 0x34c   :  { %v719_v41 = vmax.f32 %v715_v38, %v696_v13 }
 0x34d   :  { %v2871_v24 = vpop.f32.mrf.mxu1 }
 0x34e   :  { %v722_v17 = vmax.f32 %v718_v23, %v2871_v24 }
 0x34f   :  { %v699_v28 = vpop.f32.mrf.mxu1 }
 0x350   :  { %v720_v42 = vmax.f32 %v716_v40, %v699_v28  ;;  %v724_v30 = vmax.f32 %v721_v15, %v722_v17 }
 0x352   :  { %v723_v43 = vmax.f32 %v719_v41, %v720_v42 }
 0x354   :  { %v725_v32 = vmax.f32 %v723_v43, %v724_v30 }
 0x356   :  { %v726_v29 = vrot.slane %v725_v32, 4 }
 0x358   :  { %v727_v31 = vmax.f32 %v725_v32, %v726_v29 }
 0x35a   :  { %v728_v34 = vrot.slane %v727_v31, 2 }
 0x35c   :  { %v729_v36 = vmax.f32 %v727_v31, %v728_v34 }
 0x35e   :  { %v730_v61 = vrot.slane %v729_v36, 1 }
 0x360   :  { %v731_v60 = vmax.f32 %v729_v36, %v730_v61 }
 0x362   :  { %v732_v37 = vsub.f32 %v648_v56, %v731_v60  ;;  %v733_v44 = vsub.f32 %v651_v58, %v731_v60  ;;  %v734_v45 = vsub.f32 %v2858_v55, %v731_v60  ;;  %v735_v39 = vsub.f32 %v2859_v57, %v731_v60 }
 0x363   :  { %v736_v48 = vsub.f32 %v664_v63, %v731_v60  ;;  %v737_v50 = vsub.f32 %v667_v2, %v731_v60  ;;  %v738_v35 = vsub.f32 %v2862_v59, %v731_v60  ;;  %v739_v51 = vsub.f32 %v2863_v1, %v731_v60 }
 0x364   :  { %v748_v46 = vmul.f32 1.442695, %v732_v37  ;;  %v750_v47 = vmul.f32 1.442695, %v733_v44  ;;  %v752_v33 = vmul.f32 1.442695, %v734_v45  ;;  %v740_v53 = vsub.f32 %v680_v7, %v731_v60 }
 0x365   :  { %v754_v49 = vmul.f32 1.442695, %v735_v39  ;;  %v756_v52 = vmul.f32 1.442695, %v736_v48  ;;  %v741_v54 = vsub.f32 %v683_v10, %v731_v60  ;;  %v758_v12 = vmul.f32 1.442695, %v737_v50 }
 0x366   :  { %3178 = vpow2.f32 %v748_v46  ;;  %v746_v56 = vsub.f32 %v2870_v11, %v731_v60  ;;  %v760_v58 = vmul.f32 1.442695, %v738_v35  ;;  %v747_v55 = vsub.f32 %v2871_v24, %v731_v60 }
 0x367   :  { %3180 = vpow2.f32 %v750_v47  ;;  %v762_v57 = vmul.f32 1.442695, %v739_v51  ;;  %v744_v14 = vsub.f32 %v696_v13, %v731_v60  ;;  %v764_v20 = vmul.f32 1.442695, %v740_v53 }
 0x368   :  { %3182 = vpow2.f32 %v752_v33  ;;  %v745_v63 = vsub.f32 %v699_v28, %v731_v60  ;;  %v766_v21 = vmul.f32 1.442695, %v741_v54  ;;  %v776_v2 = vmul.f32 1.442695, %v746_v56 }
 0x369   :  { %3184 = vpow2.f32 %v754_v49  ;;  %v742_v59 = vsub.f32 %v3649_v4, %v731_v60  ;;  %v778_v1 = vmul.f32 1.442695, %v747_v55  ;;  %v772_v7 = vmul.f32 1.442695, %v744_v14 }
 0x36a   :  { %3186 = vpow2.f32 %v756_v52  ;;  %v743_v11 = vsub.f32 %v3651_v9, %v731_v60  ;;  %v774_v23 = vmul.f32 1.442695, %v745_v63  ;;  %v855_v14 = vrot.slane %v3585_v22, 4 }
 0x36b   :  { %3188 = vpow2.f32 %v758_v12  ;;  %v768_v26 = vmul.f32 1.442695, %v742_v59  ;;  %v259_v63 = vadd.f32 %v3571_v3, %v3575_v6 }
 0x36c   :  { %3190 = vpow2.f32 %v760_v58  ;;  %v770_v17 = vmul.f32 1.442695, %v743_v11 }
 0x36d   :  { %3192 = vpow2.f32 %v762_v57  ;;  %v871_v57 = vpop.trf.xlu0  ;;  %v801_v59 = vpack.c.bf16 %v259_v63, %v259_v63 }
 0x36e   :  { %3194 = vpow2.f32 %v764_v20  ;;  %v3142_v20 = vld [vmem:[%s3931_s3 + $0x8] ss:$0 sps:$4 sm:$0xff]  }
 0x36f   :  { %3196 = vpow2.f32 %v766_v21 }
 0x370   :  { %3198 = vpow2.f32 %v776_v2  ;;  %v861_v2 = vsel %vm279_vm1, %v855_v14, %v3142_v20 }
 0x371   :  { %3200 = vpow2.f32 %v778_v1  ;;  %v872_v21 = vpop.trf.xlu0 }
 0x372   :  { %3202 = vpow2.f32 %v772_v7 }
 0x373   :  { %v3656_v10 = vpop.eup %3178  ;;  %3204 = vpow2.f32 %v774_v23 }
 0x374   :  { %v3659_v24 = vpop.eup %3180  ;;  %3206 = vpow2.f32 %v768_v26 }
 0x375   :  { %v3183_v13 = vpop.eup %3182  ;;  %v780_v38 = vadd.f32 %v3659_v24, %v3656_v10  ;;  %v802_v4 = vpack.c.bf16 %v3659_v24, %v3656_v10  ;;  %3208 = vpow2.f32 %v770_v17  ;;  %v873_v1 = vpop.trf.xlu0 }
 0x376   :  { %v3185_v40 = vpop.eup %3184 }
 0x377   :  { %v781_v28 = vadd.f32 %v3183_v13, %v780_v38  ;;  %v803_v9 = vpack.c.bf16 %v3185_v40, %v3183_v13  ;;  %v3187_v41 = vpop.eup %3186 }
 0x378   :  { %v3189_v30 = vpop.eup %3188 }
 0x379   :  { %v782_v15 = vadd.f32 %v3185_v40, %v781_v28  ;;  %v3191_v43 = vpop.eup %3190  ;;  %v804_v55 = vpack.c.bf16 %v3189_v30, %v3187_v41  ;;  %v874_v22 = vpop.trf.xlu0 }
 0x37a   :  { %v3193_v29 = vpop.eup %3192 }
 0x37b   :  { %v783_v42 = vadd.f32 %v3187_v41, %v782_v15  ;;  %v3195_v31 = vpop.eup %3194  ;;  %v805_v58 = vpack.c.bf16 %v3193_v29, %v3191_v43 }
 0x37c   :  { %v3197_v36 = vpop.eup %3196 }
 0x37d   :  { %v784_v32 = vadd.f32 %v3189_v30, %v783_v42  ;;  %v3199_v61 = vpop.eup %3198  ;;  %v806_v12 = vpack.c.bf16 %v3197_v36, %v3195_v31  ;;  %v875_v3 = vpop.trf.xlu0 }
 0x37e   :  { %v3201_v37 = vpop.eup %3200 }
 0x37f   :  { %v785_v34 = vadd.f32 %v3191_v43, %v784_v32  ;;  %v3203_v44 = vpop.eup %3202  ;;  %v809_v39 = vpack.c.bf16 %v3201_v37, %v3199_v61 }
 0x380   :  { %v3205_v46 = vpop.eup %3204 }
 0x381   :  { %v786_v60 = vadd.f32 %v3193_v29, %v785_v34  ;;  %2873 = vmatpush3.bf16.msra.mxu0 %v809_v39  ;;  %v3207_v33 = vpop.eup %3206  ;;  %v808_v49 = vpack.c.bf16 %v3205_v46, %v3203_v44  ;;  %v876_v6 = vpop.trf.xlu0 }
 0x382   :  { %2874 = vmatprep.subr.bf16.mxu0 %v3443_v27  ;;  %v3209_v50 = vpop.eup %3208 }
 0x383   :  { %v787_v45 = vadd.f32 %v3195_v31, %v786_v60  ;;  %v807_v52 = vpack.c.bf16 %v3209_v50, %v3207_v33 }
 0x385   :  { %v788_v47 = vadd.f32 %v3197_v36, %v787_v45  ;;  %2875 = vmatpush3.bf16.msra.mxu0 %v808_v49  ;;  %v877_v7 = vpop.trf.xlu0 }
 0x386   :  { %2876 = vmatprep.subr.bf16.mxu0 %v3443_v27 }
 0x387   :  { %v789_v48 = vadd.f32 %v3207_v33, %v788_v47 }
 0x389   :  { %v790_v35 = vadd.f32 %v3209_v50, %v789_v48  ;;  %2877 = vmatpush3.bf16.msra.mxu0 %v807_v52  ;;  %v878_v10 = vpop.trf.xlu0 }
 0x38a   :  { %2878 = vmatprep.subr.bf16.mxu0 %v3443_v27 }
 0x38b   :  { %v791_v51 = vadd.f32 %v3203_v44, %v790_v35 }
 0x38d   :  { %v792_v53 = vadd.f32 %v3205_v46, %v791_v51  ;;  %2879 = vmatpush3.bf16.msra.mxu0 %v806_v12 }
 0x38e   :  { %2880 = vmatprep.subr.bf16.mxu0 %v3443_v27 }
 0x38f   :  { %v793_v54 = vadd.f32 %v3199_v61, %v792_v53 }
 0x391   :  { %v794_v56 = vadd.f32 %v3201_v37, %v793_v54  ;;  %2881 = vmatpush3.bf16.msra.mxu0 %v805_v58 }
 0x392   :  { %2882 = vmatprep.subr.bf16.mxu0 %v3443_v27 }
 0x393   :  { %v795_v11 = vrot.slane %v794_v56, 4 }
 0x395   :  { %2883 = vmatpush3.bf16.msra.mxu0 %v804_v55  ;;  %v796_v23 = vadd.f32 %v795_v11, %v794_v56 }
 0x396   :  { %2884 = vmatprep.subr.bf16.mxu0 %v3443_v27 }
 0x397   :  { %v797_v24 = vrot.slane %v796_v23, 2 }
 0x399   :  { %2885 = vmatpush3.bf16.msra.mxu0 %v803_v9  ;;  %v798_v13 = vadd.f32 %v797_v24, %v796_v23 }
 0x39a   :  { %2886 = vmatprep.subr.bf16.mxu0 %v3443_v27 }
 0x39b   :  { %v799_v26 = vrot.slane %v798_v13, 1 }
 0x39d   :  { %2887 = vmatpush3.bf16.msra.mxu0 %v802_v4  ;;  %v800_v38 = vadd.f32 %v799_v26, %v798_v13  ;;  %v3690_v4 = vpop.f32.mrf.mxu0 }
 0x39e   :  { %2892 = vmatprep.subr.bf16.mxu0 %v861_v2 }
 0x39f   :  { %3210 = vrcp.f32 %v800_v38  ;;  %v3692_v40 = vpop.f32.mrf.mxu0 }
 0x3a0   :  { %2889 = vmatmul.mubr.bf16.vlgmr.msra.gmra.mxu0 %v801_v59 }
 0x3a1   :  { %2893 = vmatpush3.bf16.msra.mxu0 %v861_v2  ;;  %2894 = vmatprep.mubr.msk.bf16.mxu0 %vm300_vm2, %v871_v57  ;;  %v3694_v17 = vpop.f32.mrf.mxu0 }
 0x3a2   :  { %2948 = vmatprep.subr.bf16.mxu0 %v3443_v27 }
 0x3a3   :  { %v3696_v28 = vpop.f32.mrf.mxu0 }
 0x3a8   :  { %2895 = vmatmul.mubr.msk.bf16.vlgmr.msra.gmra.mxu0 %vm300_vm2, %v872_v21 }
 0x3a9   :  { %2898 = vmatprep.mubr.msk.bf16.mxu0 %vm300_vm2, %v873_v1 }
 0x3ac   :  { %v3211_v9 = vpop.eup %3210 }
 0x3b0   :  { %2899 = vmatmul.mubr.msk.bf16.gmra.mxu0 %vm300_vm2, %v874_v22 }
 0x3b1   :  { %2902 = vmatprep.mubr.msk.bf16.mxu0 %vm300_vm2, %v875_v3 }
 0x3b8   :  { %2903 = vmatmul.mubr.msk.bf16.gmra.mxu0 %vm300_vm2, %v876_v6 }
 0x3b9   :  { %2906 = vmatprep.mubr.msk.bf16.mxu0 %vm300_vm2, %v877_v7 }
 0x3c0   :  { %2907 = vmatmul.mubr.msk.bf16.gmra.mxu0 %vm300_vm2, %v878_v10 }
 0x3c1   :  { %2964 = vmatprep.mubr.msk.bf16.mxu0 %vm3444_vm3, %v3443_v27 }
 0x460   :  { %v844_v15 = vpop.f32.mrf.mxu0 }
 0x461   :  { %v851_v41 = vmul.f32 %v3211_v9, %v844_v15 }
 0x462   :  { %v2890_v42 = vpop.f32.mrf.mxu0 }
 0x463   :  { %852 = vst [vmem:[#allocation2 + $0x8] sm:$0xff] %v851_v41 }
 0x464   :  { %v847_v30 = vpop.f32.mrf.mxu0 }
 0x466   :  { %v2891_v43 = vpop.f32.mrf.mxu0 }
 0x468   :  { %v2896_v32 = vpop.f32.mrf.mxu0 }
 0x46a   :  { %v937_v29 = vpop.f32.mrf.mxu0 }
 0x46c   :  { %v2897_v31 = vpop.f32.mrf.mxu0 }
 0x46e   :  { %v940_v34 = vpop.f32.mrf.mxu0 }
 0x470   :  { %v2900_v36 = vpop.f32.mrf.mxu0 }
 0x471   :  { %v1002_v49 = vmax.f32 %v2896_v32, %v2900_v36 }
 0x472   :  { %v953_v61 = vpop.f32.mrf.mxu0 }
 0x473   :  { %v1000_v50 = vmax.f32 %v937_v29, %v953_v61 }
 0x474   :  { %v2901_v60 = vpop.f32.mrf.mxu0 }
 0x475   :  { %v1003_v33 = vmax.f32 %v2897_v31, %v2901_v60 }
 0x476   :  { %v956_v37 = vpop.f32.mrf.mxu0 }
 0x477   :  { %v1001_v35 = vmax.f32 %v940_v34, %v956_v37 }
 0x478   :  { %v3698_v44 = vpop.f32.mrf.mxu0 }
 0x479   :  { %v1006_v53 = vmax.f32 %v1002_v49, %v3698_v44 }
 0x47a   :  { %v969_v45 = vpop.f32.mrf.mxu0 }
 0x47b   :  { %v1004_v54 = vmax.f32 %v1000_v50, %v969_v45 }
 0x47c   :  { %v3700_v39 = vpop.f32.mrf.mxu0 }
 0x47d   :  { %v1007_v51 = vmax.f32 %v1003_v33, %v3700_v39 }
 0x47e   :  { %v972_v46 = vpop.f32.mrf.mxu0 }
 0x47f   :  { %v1005_v12 = vmax.f32 %v1001_v35, %v972_v46 }
 0x480   :  { %v2908_v47 = vpop.f32.mrf.mxu0 }
 0x481   :  { %v1010_v55 = vmax.f32 %v1006_v53, %v2908_v47 }
 0x482   :  { %v985_v48 = vpop.f32.mrf.mxu0 }
 0x483   :  { %v1008_v57 = vmax.f32 %v1004_v54, %v985_v48 }
 0x484   :  { %v2909_v52 = vpop.f32.mrf.mxu0 }
 0x485   :  { %v1011_v56 = vmax.f32 %v1007_v51, %v2909_v52 }
 0x486   :  { %v988_v58 = vpop.f32.mrf.mxu0 }
 0x487   :  { %v1009_v14 = vmax.f32 %v1005_v12, %v988_v58  ;;  %v1013_v20 = vmax.f32 %v1010_v55, %v1011_v56 }
 0x489   :  { %v1012_v63 = vmax.f32 %v1008_v57, %v1009_v14 }
 0x48b   :  { %v1014_v21 = vmax.f32 %v1012_v63, %v1013_v20 }
 0x48d   :  { %v1015_v2 = vrot.slane %v1014_v21, 4 }
 0x48f   :  { %v1016_v59 = vmax.f32 %v1014_v21, %v1015_v2 }
 0x491   :  { %v1017_v1 = vrot.slane %v1016_v59, 2 }
 0x493   :  { %v1018_v22 = vmax.f32 %v1016_v59, %v1017_v1 }
 0x495   :  { %v1019_v3 = vrot.slane %v1018_v22, 1 }
 0x497   :  { %v1020_v6 = vmax.f32 %v1018_v22, %v1019_v3 }
 0x499   :  { %v1021_v7 = vsub.f32 %v937_v29, %v1020_v6  ;;  %v1022_v10 = vsub.f32 %v940_v34, %v1020_v6  ;;  %v1023_v11 = vsub.f32 %v2896_v32, %v1020_v6  ;;  %v1024_v23 = vsub.f32 %v2897_v31, %v1020_v6 }
 0x49a   :  { %v1025_v38 = vsub.f32 %v953_v61, %v1020_v6  ;;  %v1026_v15 = vsub.f32 %v956_v37, %v1020_v6  ;;  %v1027_v41 = vsub.f32 %v2900_v36, %v1020_v6  ;;  %v1028_v42 = vsub.f32 %v2901_v60, %v1020_v6 }
 0x49b   :  { %v1037_v24 = vmul.f32 1.442695, %v1021_v7  ;;  %v1039_v13 = vmul.f32 1.442695, %v1022_v10  ;;  %v1041_v26 = vmul.f32 1.442695, %v1023_v11  ;;  %v1029_v43 = vsub.f32 %v969_v45, %v1020_v6 }
 0x49c   :  { %v1043_v9 = vmul.f32 1.442695, %v1024_v23  ;;  %v1045_v30 = vmul.f32 1.442695, %v1025_v38  ;;  %v1030_v33 = vsub.f32 %v972_v46, %v1020_v6  ;;  %v1047_v49 = vmul.f32 1.442695, %v1026_v15 }
 0x49d   :  { %3212 = vpow2.f32 %v1037_v24  ;;  %v1035_v29 = vsub.f32 %v2908_v47, %v1020_v6  ;;  %v1049_v34 = vmul.f32 1.442695, %v1027_v41  ;;  %v1036_v32 = vsub.f32 %v2909_v52, %v1020_v6 }
 0x49e   :  { %3214 = vpow2.f32 %v1039_v13  ;;  %v1051_v31 = vmul.f32 1.442695, %v1028_v42  ;;  %v1033_v50 = vsub.f32 %v985_v48, %v1020_v6  ;;  %v1053_v35 = vmul.f32 1.442695, %v1029_v43 }
 0x49f   :  { %3216 = vpow2.f32 %v1041_v26  ;;  %v1034_v61 = vsub.f32 %v988_v58, %v1020_v6  ;;  %v1055_v51 = vmul.f32 1.442695, %v1030_v33  ;;  %v1065_v37 = vmul.f32 1.442695, %v1035_v29 }
 0x4a0   :  { %3218 = vpow2.f32 %v1043_v9  ;;  %v1031_v36 = vsub.f32 %v3698_v44, %v1020_v6  ;;  %v1067_v60 = vmul.f32 1.442695, %v1036_v32  ;;  %v1061_v45 = vmul.f32 1.442695, %v1033_v50  ;;  %v3717_v32 = vpop.permute.xlu1 %103 }
 0x4a1   :  { %3220 = vpow2.f32 %v1045_v30  ;;  %v1032_v47 = vsub.f32 %v3700_v39, %v1020_v6  ;;  %v1063_v52 = vmul.f32 1.442695, %v1034_v61 }
 0x4a2   :  { %3222 = vpow2.f32 %v1047_v49  ;;  %v1057_v54 = vmul.f32 1.442695, %v1031_v36  ;;  %v265_v36 = vadd.f32 %v3690_v4, %v3717_v32 }
 0x4a3   :  { %3224 = vpow2.f32 %v1049_v34  ;;  %v1059_v58 = vmul.f32 1.442695, %v1032_v47 }
 0x4a4   :  { %3226 = vpow2.f32 %v1051_v31  ;;  %v1160_v50 = vpop.trf.xlu1 }
 0x4a5   :  { %3228 = vpow2.f32 %v1053_v35 }
 0x4a6   :  { %3230 = vpow2.f32 %v1055_v51  ;;  %v1144_v51 = vrot.slane %v3580_v16, 4 }
 0x4a7   :  { %3232 = vpow2.f32 %v1065_v37  ;;  %v3143_v37 = vld [vmem:[%s3931_s3 + $0xc] ss:$0 sps:$4 sm:$0xff]  }
 0x4a8   :  { %3234 = vpow2.f32 %v1067_v60  ;;  %v1161_v61 = vpop.trf.xlu1  ;;  %v1150_v60 = vsel %vm279_vm1, %v1144_v51, %v3143_v37 }
 0x4a9   :  { %3236 = vpow2.f32 %v1061_v45  ;;  %v1090_v45 = vpack.c.bf16 %v265_v36, %v265_v36 }
 0x4aa   :  { %v3705_v46 = vpop.eup %3212  ;;  %3238 = vpow2.f32 %v1063_v52 }
 0x4ab   :  { %v3708_v53 = vpop.eup %3214  ;;  %3240 = vpow2.f32 %v1057_v54 }
 0x4ac   :  { %v3217_v48 = vpop.eup %3216  ;;  %v1069_v12 = vadd.f32 %v3708_v53, %v3705_v46  ;;  %v1091_v44 = vpack.c.bf16 %v3708_v53, %v3705_v46  ;;  %3242 = vpow2.f32 %v1059_v58  ;;  %v1162_v46 = vpop.trf.xlu1 }
 0x4ad   :  { %v3219_v56 = vpop.eup %3218 }
 0x4ae   :  { %v1070_v55 = vadd.f32 %v3217_v48, %v1069_v12  ;;  %v1092_v39 = vpack.c.bf16 %v3219_v56, %v3217_v48  ;;  %v3221_v14 = vpop.eup %3220 }
 0x4af   :  { %v3223_v63 = vpop.eup %3222 }
 0x4b0   :  { %v1071_v57 = vadd.f32 %v3219_v56, %v1070_v55  ;;  %v3225_v21 = vpop.eup %3224  ;;  %v1093_v35 = vpack.c.bf16 %v3223_v63, %v3221_v14  ;;  %v1163_v16 = vpop.trf.xlu1 }
 0x4b1   :  { %v3227_v59 = vpop.eup %3226 }
 0x4b2   :  { %v1072_v20 = vadd.f32 %v3221_v14, %v1071_v57  ;;  %v3229_v1 = vpop.eup %3228  ;;  %v1094_v31 = vpack.c.bf16 %v3227_v59, %v3225_v21 }
 0x4b3   :  { %v3231_v3 = vpop.eup %3230 }
 0x4b4   :  { %v1073_v2 = vadd.f32 %v3223_v63, %v1072_v20  ;;  %v3233_v6 = vpop.eup %3232  ;;  %v1095_v29 = vpack.c.bf16 %v3231_v3, %v3229_v1  ;;  %v1164_v4 = vpop.trf.xlu1 }
 0x4b5   :  { %v3235_v10 = vpop.eup %3234 }
 0x4b6   :  { %v1074_v22 = vadd.f32 %v3225_v21, %v1073_v2  ;;  %v3237_v11 = vpop.eup %3236  ;;  %v1098_v24 = vpack.c.bf16 %v3235_v10, %v3233_v6 }
 0x4b7   :  { %v3239_v13 = vpop.eup %3238 }
 0x4b8   :  { %v1075_v7 = vadd.f32 %v3227_v59, %v1074_v22  ;;  %2911 = vmatpush3.bf16.msra.mxu1 %v1098_v24  ;;  %v3241_v38 = vpop.eup %3240  ;;  %v1097_v15 = vpack.c.bf16 %v3239_v13, %v3237_v11  ;;  %v1165_v47 = vpop.trf.xlu1 }
 0x4b9   :  { %2912 = vmatprep.subr.bf16.mxu1 %v3443_v27  ;;  %v3243_v41 = vpop.eup %3242 }
 0x4ba   :  { %v1076_v23 = vadd.f32 %v3229_v1, %v1075_v7  ;;  %v1096_v43 = vpack.c.bf16 %v3243_v41, %v3241_v38 }
 0x4bc   :  { %v1077_v26 = vadd.f32 %v3231_v3, %v1076_v23  ;;  %2913 = vmatpush3.bf16.msra.mxu1 %v1097_v15  ;;  %v1166_v52 = vpop.trf.xlu1 }
 0x4bd   :  { %2914 = vmatprep.subr.bf16.mxu1 %v3443_v27 }
 0x4be   :  { %v1078_v9 = vadd.f32 %v3241_v38, %v1077_v26 }
 0x4c0   :  { %v1079_v42 = vadd.f32 %v3243_v41, %v1078_v9  ;;  %2915 = vmatpush3.bf16.msra.mxu1 %v1096_v43  ;;  %v1167_v53 = vpop.trf.xlu1 }
 0x4c1   :  { %2916 = vmatprep.subr.bf16.mxu1 %v3443_v27 }
 0x4c2   :  { %v1080_v30 = vadd.f32 %v3237_v11, %v1079_v42 }
 0x4c4   :  { %v1081_v33 = vadd.f32 %v3239_v13, %v1080_v30  ;;  %2917 = vmatpush3.bf16.msra.mxu1 %v1095_v29 }
 0x4c5   :  { %2918 = vmatprep.subr.bf16.mxu1 %v3443_v27 }
 0x4c6   :  { %v1082_v49 = vadd.f32 %v3233_v6, %v1081_v33 }
 0x4c8   :  { %v1083_v34 = vadd.f32 %v3235_v10, %v1082_v49  ;;  %2919 = vmatpush3.bf16.msra.mxu1 %v1094_v31 }
 0x4c9   :  { %2920 = vmatprep.subr.bf16.mxu1 %v3443_v27 }
 0x4ca   :  { %v1084_v48 = vrot.slane %v1083_v34, 4 }
 0x4cc   :  { %2921 = vmatpush3.bf16.msra.mxu1 %v1093_v35  ;;  %v1085_v54 = vadd.f32 %v1084_v48, %v1083_v34 }
 0x4cd   :  { %2922 = vmatprep.subr.bf16.mxu1 %v3443_v27 }
 0x4ce   :  { %v1086_v12 = vrot.slane %v1085_v54, 2 }
 0x4d0   :  { %2923 = vmatpush3.bf16.msra.mxu1 %v1092_v39 }
 0x4d1   :  { %2924 = vmatprep.subr.bf16.mxu1 %v3443_v27 }
 0x4d4   :  { %2925 = vmatpush3.bf16.msra.mxu1 %v1091_v44  ;;  %v1087_v44 = vadd.f32 %v1086_v12, %v1085_v54 }
 0x4d5   :  { %2930 = vmatprep.subr.bf16.mxu1 %v1150_v60 }
 0x4d6   :  { %v1088_v56 = vrot.slane %v1087_v44, 1 }
 0x4d7   :  { %2927 = vmatmul.mubr.bf16.vlgmr.msra.gmra.mxu1 %v1090_v45 }
 0x4d8   :  { %2931 = vmatpush3.bf16.msra.mxu1 %v1150_v60  ;;  %2932 = vmatprep.mubr.msk.bf16.mxu1 %vm300_vm2, %v1160_v50  ;;  %v1089_v58 = vadd.f32 %v1088_v56, %v1087_v44 }
 0x4d9   :  { %2986 = vmatprep.subr.bf16.mxu1 %v3443_v27 }
 0x4da   :  { %3244 = vrcp.f32 %v1089_v58 }
 0x4df   :  { %2933 = vmatmul.mubr.msk.bf16.vlgmr.msra.gmra.mxu1 %vm300_vm2, %v1161_v61 }
 0x4e0   :  { %2936 = vmatprep.mubr.msk.bf16.mxu1 %vm300_vm2, %v1162_v46 }
 0x4e7   :  { %2937 = vmatmul.mubr.msk.bf16.gmra.mxu1 %vm300_vm2, %v1163_v16  ;;  %v3245_v55 = vpop.eup %3244 }
 0x4e8   :  { %2940 = vmatprep.mubr.msk.bf16.mxu1 %vm300_vm2, %v1164_v4 }
 0x4ef   :  { %2941 = vmatmul.mubr.msk.bf16.gmra.mxu1 %vm300_vm2, %v1165_v47 }
 0x4f0   :  { %2944 = vmatprep.mubr.msk.bf16.mxu1 %vm300_vm2, %v1166_v52 }
 0x4f7   :  { %2945 = vmatmul.mubr.msk.bf16.gmra.mxu1 %vm300_vm2, %v1167_v53 }
 0x4f8   :  { %3002 = vmatprep.mubr.msk.bf16.mxu1 %vm3444_vm3, %v3443_v27 }
 0x597   :  { %v1133_v39 = vpop.f32.mrf.mxu1 }
 0x598   :  { %v1140_v57 = vmul.f32 %v3245_v55, %v1133_v39 }
 0x599   :  { %v2928_v14 = vpop.f32.mrf.mxu1 }
 0x59a   :  { %1141 = vst [vmem:[#allocation2 + $0x10] sm:$0xff] %v1140_v57 }
 0x59b   :  { %v1136_v20 = vpop.f32.mrf.mxu1 }
 0x59d   :  { %v2929_v63 = vpop.f32.mrf.mxu1 }
 0x59f   :  { %v2934_v21 = vpop.f32.mrf.mxu1 }
 0x5a1   :  { %v1226_v2 = vpop.f32.mrf.mxu1 }
 0x5a3   :  { %v2935_v59 = vpop.f32.mrf.mxu1 }
 0x5a5   :  { %v1229_v1 = vpop.f32.mrf.mxu1 }
 0x5a7   :  { %v2938_v22 = vpop.f32.mrf.mxu1 }
 0x5a8   :  { %v1291_v9 = vmax.f32 %v2934_v21, %v2938_v22 }
 0x5a9   :  { %v1242_v3 = vpop.f32.mrf.mxu1 }
 0x5aa   :  { %v1289_v15 = vmax.f32 %v1226_v2, %v1242_v3 }
 0x5ab   :  { %v2939_v6 = vpop.f32.mrf.mxu1 }
 0x5ac   :  { %v1292_v26 = vmax.f32 %v2935_v59, %v2939_v6 }
 0x5ad   :  { %v1245_v7 = vpop.f32.mrf.mxu1 }
 0x5ae   :  { %v1290_v41 = vmax.f32 %v1229_v1, %v1245_v7 }
 0x5af   :  { %v3741_v10 = vpop.f32.mrf.mxu1 }
 0x5b0   :  { %v1295_v43 = vmax.f32 %v1291_v9, %v3741_v10 }
 0x5b1   :  { %v1258_v11 = vpop.f32.mrf.mxu1 }
 0x5b2   :  { %v1293_v33 = vmax.f32 %v1289_v15, %v1258_v11 }
 0x5b3   :  { %v3743_v23 = vpop.f32.mrf.mxu1 }
 0x5b4   :  { %v1296_v42 = vmax.f32 %v1292_v26, %v3743_v23 }
 0x5b5   :  { %v1261_v24 = vpop.f32.mrf.mxu1 }
 0x5b6   :  { %v1294_v49 = vmax.f32 %v1290_v41, %v1261_v24 }
 0x5b7   :  { %v2946_v13 = vpop.f32.mrf.mxu1 }
 0x5b8   :  { %v1299_v31 = vmax.f32 %v1295_v43, %v2946_v13 }
 0x5b9   :  { %v1274_v38 = vpop.f32.mrf.mxu1 }
 0x5ba   :  { %v1297_v50 = vmax.f32 %v1293_v33, %v1274_v38 }
 0x5bb   :  { %v2947_v30 = vpop.f32.mrf.mxu1 }
 0x5bc   :  { %v1300_v29 = vmax.f32 %v1296_v42, %v2947_v30 }
 0x5bd   :  { %v1277_v34 = vpop.f32.mrf.mxu1 }
 0x5be   :  { %v1298_v35 = vmax.f32 %v1294_v49, %v1277_v34  ;;  %v1302_v61 = vmax.f32 %v1299_v31, %v1300_v29 }
 0x5c0   :  { %v1301_v51 = vmax.f32 %v1297_v50, %v1298_v35 }
 0x5c2   :  { %v1303_v37 = vmax.f32 %v1301_v51, %v1302_v61 }
 0x5c4   :  { %v1304_v36 = vrot.slane %v1303_v37, 4 }
 0x5c6   :  { %v1305_v60 = vmax.f32 %v1303_v37, %v1304_v36 }
 0x5c8   :  { %v1306_v45 = vrot.slane %v1305_v60, 2 }
 0x5ca   :  { %v1307_v46 = vmax.f32 %v1305_v60, %v1306_v45 }
 0x5cc   :  { %v1308_v16 = vrot.slane %v1307_v46, 1 }
 0x5ce   :  { %v1309_v4 = vmax.f32 %v1307_v46, %v1308_v16 }
 0x5d0   :  { %v1310_v47 = vsub.f32 %v1226_v2, %v1309_v4  ;;  %v1311_v52 = vsub.f32 %v1229_v1, %v1309_v4  ;;  %v1312_v53 = vsub.f32 %v2934_v21, %v1309_v4  ;;  %v1313_v48 = vsub.f32 %v2935_v59, %v1309_v4 }
 0x5d1   :  { %v1314_v56 = vsub.f32 %v1242_v3, %v1309_v4  ;;  %v1315_v55 = vsub.f32 %v1245_v7, %v1309_v4  ;;  %v1316_v39 = vsub.f32 %v2938_v22, %v1309_v4  ;;  %v1317_v57 = vsub.f32 %v2939_v6, %v1309_v4 }
 0x5d2   :  { %v1326_v54 = vmul.f32 1.442695, %v1310_v47  ;;  %v1328_v12 = vmul.f32 1.442695, %v1311_v52  ;;  %v1330_v44 = vmul.f32 1.442695, %v1312_v53  ;;  %v1318_v20 = vsub.f32 %v1258_v11, %v1309_v4 }
 0x5d3   :  { %v1332_v58 = vmul.f32 1.442695, %v1313_v48  ;;  %v1334_v14 = vmul.f32 1.442695, %v1314_v56  ;;  %v1319_v63 = vsub.f32 %v1261_v24, %v1309_v4  ;;  %v1336_v26 = vmul.f32 1.442695, %v1315_v55 }
 0x5d4   :  { %3246 = vpow2.f32 %v1326_v54  ;;  %v1324_v2 = vsub.f32 %v2946_v13, %v1309_v4  ;;  %v1338_v1 = vmul.f32 1.442695, %v1316_v39  ;;  %v1325_v21 = vsub.f32 %v2947_v30, %v1309_v4 }
 0x5d5   :  { %3248 = vpow2.f32 %v1328_v12  ;;  %v1340_v59 = vmul.f32 1.442695, %v1317_v57  ;;  %v1322_v9 = vsub.f32 %v1274_v38, %v1309_v4  ;;  %v1342_v15 = vmul.f32 1.442695, %v1318_v20 }
 0x5d6   :  { %3250 = vpow2.f32 %v1330_v44  ;;  %v1323_v3 = vsub.f32 %v1277_v34, %v1309_v4  ;;  %v1344_v41 = vmul.f32 1.442695, %v1319_v63  ;;  %v1354_v7 = vmul.f32 1.442695, %v1324_v2 }
 0x5d7   :  { %3252 = vpow2.f32 %v1332_v58  ;;  %v1320_v22 = vsub.f32 %v3741_v10, %v1309_v4  ;;  %v1356_v6 = vmul.f32 1.442695, %v1325_v21  ;;  %v1350_v11 = vmul.f32 1.442695, %v1322_v9  ;;  %v1445_v21 = vpop.trf.xlu1  ;;  %v3763_v9 = vpop.permute.xlu0 %108 }
 0x5d8   :  { %3254 = vpow2.f32 %v1334_v14  ;;  %v1321_v13 = vsub.f32 %v3743_v23, %v1309_v4  ;;  %v1352_v42 = vmul.f32 1.442695, %v1323_v3  ;;  %v1433_v3 = vrot.slane %v3591_v25, 4 }
 0x5d9   :  { %3256 = vpow2.f32 %v1336_v26  ;;  %v1346_v43 = vmul.f32 1.442695, %v1320_v22 }
 0x5da   :  { %3258 = vpow2.f32 %v1338_v1  ;;  %v1348_v29 = vmul.f32 1.442695, %v1321_v13 }
 0x5db   :  { %3260 = vpow2.f32 %v1340_v59 }
 0x5dc   :  { %3262 = vpow2.f32 %v1342_v15  ;;  %v1446_v15 = vpop.trf.xlu1 }
 0x5dd   :  { %3264 = vpow2.f32 %v1344_v41  ;;  %v269_v41 = vadd.f32 %v3694_v17, %v3763_v9 }
 0x5de   :  { %3266 = vpow2.f32 %v1354_v7  ;;  %v3416_v7 = vld [vmem:[%s3931_s3] ss:$0 sps:$4 sm:$0xff]  }
 0x5df   :  { %3268 = vpow2.f32 %v1356_v6  ;;  %v1435_v22 = vsel %vm279_vm1, %v1433_v3, %v3416_v7  ;;  %v1379_v6 = vpack.c.bf16 %v269_v41, %v269_v41 }
 0x5e0   :  { %3270 = vpow2.f32 %v1350_v11  ;;  %v1447_v11 = vpop.trf.xlu1 }
 0x5e1   :  { %v3748_v24 = vpop.eup %3246  ;;  %3272 = vpow2.f32 %v1352_v42 }
 0x5e2   :  { %v3751_v30 = vpop.eup %3248  ;;  %3274 = vpow2.f32 %v1346_v43 }
 0x5e3   :  { %v3251_v38 = vpop.eup %3250  ;;  %v1358_v33 = vadd.f32 %v3751_v30, %v3748_v24  ;;  %v1380_v10 = vpack.c.bf16 %v3751_v30, %v3748_v24  ;;  %3276 = vpow2.f32 %v1348_v29 }
 0x5e4   :  { %v3253_v49 = vpop.eup %3252  ;;  %v1448_v25 = vpop.trf.xlu1 }
 0x5e5   :  { %v1359_v34 = vadd.f32 %v3251_v38, %v1358_v33  ;;  %v1381_v23 = vpack.c.bf16 %v3253_v49, %v3251_v38  ;;  %v3255_v50 = vpop.eup %3254 }
 0x5e6   :  { %v3257_v61 = vpop.eup %3256 }
 0x5e7   :  { %v1360_v31 = vadd.f32 %v3253_v49, %v1359_v34  ;;  %v3259_v51 = vpop.eup %3258  ;;  %v1382_v59 = vpack.c.bf16 %v3257_v61, %v3255_v50 }
 0x5e8   :  { %v3261_v36 = vpop.eup %3260  ;;  %v1449_v17 = vpop.trf.xlu1 }
 0x5e9   :  { %v1361_v35 = vadd.f32 %v3255_v50, %v1360_v31  ;;  %v3263_v60 = vpop.eup %3262  ;;  %v1383_v1 = vpack.c.bf16 %v3261_v36, %v3259_v51 }
 0x5ea   :  { %v3265_v46 = vpop.eup %3264 }
 0x5eb   :  { %v1362_v37 = vadd.f32 %v3257_v61, %v1361_v35  ;;  %v3267_v16 = vpop.eup %3266  ;;  %v1384_v26 = vpack.c.bf16 %v3265_v46, %v3263_v60 }
 0x5ec   :  { %v3269_v47 = vpop.eup %3268  ;;  %v1450_v24 = vpop.trf.xlu1 }
 0x5ed   :  { %v1363_v45 = vadd.f32 %v3259_v51, %v1362_v37  ;;  %v3271_v52 = vpop.eup %3270  ;;  %v1387_v48 = vpack.c.bf16 %v3269_v47, %v3267_v16 }
 0x5ee   :  { %v3273_v54 = vpop.eup %3272 }
 0x5ef   :  { %v1364_v4 = vadd.f32 %v3261_v36, %v1363_v45  ;;  %2949 = vmatpush3.bf16.msra.mxu0 %v1387_v48  ;;  %v3275_v44 = vpop.eup %3274  ;;  %v1386_v58 = vpack.c.bf16 %v3273_v54, %v3271_v52 }
 0x5f0   :  { %2950 = vmatprep.subr.bf16.mxu0 %v3443_v27  ;;  %v3277_v55 = vpop.eup %3276  ;;  %v1451_v13 = vpop.trf.xlu1 }
 0x5f1   :  { %v1365_v53 = vadd.f32 %v3263_v60, %v1364_v4  ;;  %v1385_v14 = vpack.c.bf16 %v3277_v55, %v3275_v44 }
 0x5f3   :  { %v1366_v12 = vadd.f32 %v3265_v46, %v1365_v53  ;;  %2951 = vmatpush3.bf16.msra.mxu0 %v1386_v58 }
 0x5f4   :  { %2952 = vmatprep.subr.bf16.mxu0 %v3443_v27  ;;  %v1452_v42 = vpop.trf.xlu1 }
 0x5f5   :  { %v1367_v56 = vadd.f32 %v3275_v44, %v1366_v12 }
 0x5f7   :  { %v1368_v39 = vadd.f32 %v3277_v55, %v1367_v56  ;;  %2953 = vmatpush3.bf16.msra.mxu0 %v1385_v14 }
 0x5f8   :  { %2954 = vmatprep.subr.bf16.mxu0 %v3443_v27 }
 0x5f9   :  { %v1369_v57 = vadd.f32 %v3271_v52, %v1368_v39 }
 0x5fb   :  { %v1370_v20 = vadd.f32 %v3273_v54, %v1369_v57  ;;  %2955 = vmatpush3.bf16.msra.mxu0 %v1384_v26 }
 0x5fc   :  { %2956 = vmatprep.subr.bf16.mxu0 %v3443_v27 }
 0x5fd   :  { %v1371_v63 = vadd.f32 %v3267_v16, %v1370_v20 }
 0x5ff   :  { %v1372_v2 = vadd.f32 %v3269_v47, %v1371_v63  ;;  %2957 = vmatpush3.bf16.msra.mxu0 %v1383_v1 }
 0x600   :  { %2958 = vmatprep.subr.bf16.mxu0 %v3443_v27 }
 0x601   :  { %v1373_v30 = vrot.slane %v1372_v2, 4 }
 0x603   :  { %2959 = vmatpush3.bf16.msra.mxu0 %v1382_v59  ;;  %v1374_v38 = vadd.f32 %v1373_v30, %v1372_v2 }
 0x604   :  { %2960 = vmatprep.subr.bf16.mxu0 %v3443_v27 }
 0x605   :  { %v1375_v43 = vrot.slane %v1374_v38, 2 }
 0x607   :  { %2961 = vmatpush3.bf16.msra.mxu0 %v1381_v23  ;;  %v1376_v33 = vadd.f32 %v1375_v43, %v1374_v38 }
 0x608   :  { %2962 = vmatprep.subr.bf16.mxu0 %v3443_v27 }
 0x60b   :  { %2963 = vmatpush3.bf16.msra.mxu0 %v1380_v10  ;;  %v1377_v10 = vrot.slane %v1376_v33, 1 }
 0x60c   :  { %2968 = vmatprep.subr.bf16.mxu0 %v1435_v22 }
 0x60d   :  { %v1378_v49 = vadd.f32 %v1377_v10, %v1376_v33 }
 0x60e   :  { %2965 = vmatmul.mubr.bf16.vlgmr.msra.gmra.mxu0 %v1379_v6 }
 0x60f   :  { %2969 = vmatpush3.bf16.msra.mxu0 %v1435_v22  ;;  %2970 = vmatprep.mubr.msk.bf16.mxu0 %vm300_vm2, %v1445_v21  ;;  %3278 = vrcp.f32 %v1378_v49 }
 0x610   :  { %3024 = vmatprep.subr.bf16.mxu0 %v3443_v27 }
 0x616   :  { %2971 = vmatmul.mubr.msk.bf16.vlgmr.msra.gmra.mxu0 %vm300_vm2, %v1446_v15 }
 0x617   :  { %2974 = vmatprep.mubr.msk.bf16.mxu0 %vm300_vm2, %v1447_v11 }
 0x61c   :  { %v3279_v29 = vpop.eup %3278 }
 0x61e   :  { %2975 = vmatmul.mubr.msk.bf16.gmra.mxu0 %vm300_vm2, %v1448_v25 }
 0x61f   :  { %2978 = vmatprep.mubr.msk.bf16.mxu0 %vm300_vm2, %v1449_v17 }
 0x626   :  { %2979 = vmatmul.mubr.msk.bf16.gmra.mxu0 %vm300_vm2, %v1450_v24 }
 0x627   :  { %2982 = vmatprep.mubr.msk.bf16.mxu0 %vm300_vm2, %v1451_v13 }
 0x62e   :  { %2983 = vmatmul.mubr.msk.bf16.gmra.mxu0 %vm300_vm2, %v1452_v42 }
 0x62f   :  { %3040 = vmatprep.mubr.msk.bf16.mxu0 %vm3444_vm3, %v3443_v27 }
 0x6ce   :  { %v1422_v34 = vpop.f32.mrf.mxu0 }
 0x6cf   :  { %v1429_v23 = vmul.f32 %v3279_v29, %v1422_v34 }
 0x6d0   :  { %v2966_v31 = vpop.f32.mrf.mxu0 }
 0x6d1   :  { %1430 = vst [vmem:[#allocation2 + $0x18] sm:$0xff] %v1429_v23 }
 0x6d2   :  { %v1425_v50 = vpop.f32.mrf.mxu0 }
 0x6d4   :  { %v2967_v35 = vpop.f32.mrf.mxu0 }
 0x6d6   :  { %v2972_v61 = vpop.f32.mrf.mxu0 }
 0x6d8   :  { %v1511_v51 = vpop.f32.mrf.mxu0 }
 0x6da   :  { %v2973_v37 = vpop.f32.mrf.mxu0 }
 0x6dc   :  { %v1514_v36 = vpop.f32.mrf.mxu0 }
 0x6de   :  { %v2976_v60 = vpop.f32.mrf.mxu0 }
 0x6df   :  { %v1576_v44 = vmax.f32 %v2972_v61, %v2976_v60 }
 0x6e0   :  { %v1527_v45 = vpop.f32.mrf.mxu0 }
 0x6e1   :  { %v1574_v56 = vmax.f32 %v1511_v51, %v1527_v45 }
 0x6e2   :  { %v2977_v46 = vpop.f32.mrf.mxu0 }
 0x6e3   :  { %v1577_v54 = vmax.f32 %v2973_v37, %v2977_v46 }
 0x6e4   :  { %v1530_v16 = vpop.f32.mrf.mxu0 }
 0x6e5   :  { %v1575_v58 = vmax.f32 %v1514_v36, %v1530_v16 }
 0x6e6   :  { %v3784_v4 = vpop.f32.mrf.mxu0 }
 0x6e7   :  { %v1580_v57 = vmax.f32 %v1576_v44, %v3784_v4 }
 0x6e8   :  { %v1543_v47 = vpop.f32.mrf.mxu0 }
 0x6e9   :  { %v1578_v14 = vmax.f32 %v1574_v56, %v1543_v47 }
 0x6ea   :  { %v3786_v52 = vpop.f32.mrf.mxu0 }
 0x6eb   :  { %v1581_v55 = vmax.f32 %v1577_v54, %v3786_v52 }
 0x6ec   :  { %v1546_v53 = vpop.f32.mrf.mxu0 }
 0x6ed   :  { %v1579_v20 = vmax.f32 %v1575_v58, %v1546_v53 }
 0x6ee   :  { %v2984_v48 = vpop.f32.mrf.mxu0 }
 0x6ef   :  { %v1584_v2 = vmax.f32 %v1580_v57, %v2984_v48 }
 0x6f0   :  { %v1559_v12 = vpop.f32.mrf.mxu0 }
 0x6f1   :  { %v1582_v1 = vmax.f32 %v1578_v14, %v1559_v12 }
 0x6f2   :  { %v2985_v39 = vpop.f32.mrf.mxu0 }
 0x6f3   :  { %v1585_v63 = vmax.f32 %v1581_v55, %v2985_v39 }
 0x6f4   :  { %v1562_v26 = vpop.f32.mrf.mxu0 }
 0x6f5   :  { %v1583_v21 = vmax.f32 %v1579_v20, %v1562_v26  ;;  %v1587_v59 = vmax.f32 %v1584_v2, %v1585_v63 }
 0x6f7   :  { %v1586_v15 = vmax.f32 %v1582_v1, %v1583_v21 }
 0x6f9   :  { %v1588_v3 = vmax.f32 %v1586_v15, %v1587_v59 }
 0x6fb   :  { %v1589_v41 = vrot.slane %v1588_v3, 4 }
 0x6fd   :  { %v1590_v7 = vmax.f32 %v1588_v3, %v1589_v41 }
 0x6ff   :  { %v1591_v22 = vrot.slane %v1590_v7, 2 }
 0x701   :  { %v1592_v6 = vmax.f32 %v1590_v7, %v1591_v22 }
 0x703   :  { %v1593_v11 = vrot.slane %v1592_v6, 1 }
 0x705   :  { %v1594_v25 = vmax.f32 %v1592_v6, %v1593_v11 }
 0x707   :  { %v1595_v17 = vsub.f32 %v1511_v51, %v1594_v25  ;;  %v1596_v24 = vsub.f32 %v1514_v36, %v1594_v25  ;;  %v1597_v13 = vsub.f32 %v2972_v61, %v1594_v25  ;;  %v1598_v42 = vsub.f32 %v2973_v37, %v1594_v25 }
 0x708   :  { %v1599_v33 = vsub.f32 %v1527_v45, %v1594_v25  ;;  %v1600_v49 = vsub.f32 %v1530_v16, %v1594_v25  ;;  %v1601_v29 = vsub.f32 %v2976_v60, %v1594_v25  ;;  %v1602_v34 = vsub.f32 %v2977_v46, %v1594_v25 }
 0x709   :  { %v1611_v30 = vmul.f32 1.442695, %v1595_v17  ;;  %v1613_v38 = vmul.f32 1.442695, %v1596_v24  ;;  %v1615_v43 = vmul.f32 1.442695, %v1597_v13  ;;  %v1603_v31 = vsub.f32 %v1543_v47, %v1594_v25 }
 0x70a   :  { %v1617_v10 = vmul.f32 1.442695, %v1598_v42  ;;  %v1619_v23 = vmul.f32 1.442695, %v1599_v33  ;;  %v1604_v50 = vsub.f32 %v1546_v53, %v1594_v25  ;;  %v1621_v35 = vmul.f32 1.442695, %v1600_v49 }
 0x70b   :  { %3280 = vpow2.f32 %v1611_v30  ;;  %v1609_v51 = vsub.f32 %v2984_v48, %v1594_v25  ;;  %v1623_v36 = vmul.f32 1.442695, %v1601_v29  ;;  %v1610_v61 = vsub.f32 %v2985_v39, %v1594_v25 }
 0x70c   :  { %3282 = vpow2.f32 %v1613_v38  ;;  %v1625_v37 = vmul.f32 1.442695, %v1602_v34  ;;  %v1607_v54 = vsub.f32 %v1559_v12, %v1594_v25  ;;  %v1627_v44 = vmul.f32 1.442695, %v1603_v31 }
 0x70d   :  { %3284 = vpow2.f32 %v1615_v43  ;;  %v1608_v45 = vsub.f32 %v1562_v26, %v1594_v25  ;;  %v1629_v56 = vmul.f32 1.442695, %v1604_v50  ;;  %v1639_v16 = vmul.f32 1.442695, %v1609_v51 }
 0x70e   :  { %3286 = vpow2.f32 %v1617_v10  ;;  %v1605_v60 = vsub.f32 %v3784_v4, %v1594_v25  ;;  %v1641_v46 = vmul.f32 1.442695, %v1610_v61  ;;  %v1635_v47 = vmul.f32 1.442695, %v1607_v54 }
 0x70f   :  { %3288 = vpow2.f32 %v1619_v23  ;;  %v1606_v48 = vsub.f32 %v3786_v52, %v1594_v25  ;;  %v1637_v58 = vmul.f32 1.442695, %v1608_v45  ;;  %v1719_v54 = vrot.slane %v3566_v62, 4  ;;  %v3417_v45 = vld [vmem:[%s3931_s3 + $0x4] ss:$0 sps:$4 sm:$0xff]  }
 0x710   :  { %3290 = vpow2.f32 %v1621_v35  ;;  %v1631_v39 = vmul.f32 1.442695, %v1605_v60 }
 0x711   :  { %3292 = vpow2.f32 %v1623_v36  ;;  %v1633_v20 = vmul.f32 1.442695, %v1606_v48  ;;  %v1731_v36 = vpop.trf.xlu0 }
 0x712   :  { %3294 = vpow2.f32 %v1625_v37 }
 0x713   :  { %3296 = vpow2.f32 %v1627_v44  ;;  %v257_v44 = vadd.f32 %v3569_v0, %v3626_v18 }
 0x714   :  { %3298 = vpow2.f32 %v1629_v56  ;;  %v1721_v56 = vsel %vm279_vm1, %v1719_v54, %v3417_v45 }
 0x715   :  { %3300 = vpow2.f32 %v1639_v16  ;;  %v1732_v37 = vpop.trf.xlu0  ;;  %v1664_v16 = vpack.c.bf16 %v257_v44, %v257_v44 }
 0x716   :  { %3302 = vpow2.f32 %v1641_v46 }
 0x717   :  { %3304 = vpow2.f32 %v1635_v47 }
 0x718   :  { %v3791_v53 = vpop.eup %3280  ;;  %3306 = vpow2.f32 %v1637_v58 }
 0x719   :  { %v3794_v55 = vpop.eup %3282  ;;  %3308 = vpow2.f32 %v1631_v39  ;;  %v1733_v60 = vpop.trf.xlu0 }
 0x71a   :  { %v3285_v12 = vpop.eup %3284  ;;  %v1643_v57 = vadd.f32 %v3794_v55, %v3791_v53  ;;  %v1665_v4 = vpack.c.bf16 %v3794_v55, %v3791_v53  ;;  %3310 = vpow2.f32 %v1633_v20 }
 0x71b   :  { %v3287_v14 = vpop.eup %3286 }
 0x71c   :  { %v1644_v63 = vadd.f32 %v3285_v12, %v1643_v57  ;;  %v1666_v52 = vpack.c.bf16 %v3287_v14, %v3285_v12  ;;  %v3289_v2 = vpop.eup %3288 }
 0x71d   :  { %v3291_v21 = vpop.eup %3290  ;;  %v1734_v62 = vpop.trf.xlu0 }
 0x71e   :  { %v1645_v26 = vadd.f32 %v3287_v14, %v1644_v63  ;;  %v3293_v59 = vpop.eup %3292  ;;  %v1667_v61 = vpack.c.bf16 %v3291_v21, %v3289_v2 }
 0x71f   :  { %v3295_v3 = vpop.eup %3294 }
 0x720   :  { %v1646_v1 = vadd.f32 %v3289_v2, %v1645_v26  ;;  %v3297_v41 = vpop.eup %3296  ;;  %v1668_v51 = vpack.c.bf16 %v3295_v3, %v3293_v59 }
 0x721   :  { %v3299_v22 = vpop.eup %3298  ;;  %v1735_v0 = vpop.trf.xlu0 }
 0x722   :  { %v1647_v15 = vadd.f32 %v3291_v21, %v1646_v1  ;;  %v3301_v6 = vpop.eup %3300  ;;  %v1669_v50 = vpack.c.bf16 %v3299_v22, %v3297_v41 }
 0x723   :  { %v3303_v25 = vpop.eup %3302 }
 0x724   :  { %v1648_v7 = vadd.f32 %v3293_v59, %v1647_v15  ;;  %v3305_v17 = vpop.eup %3304  ;;  %v1672_v13 = vpack.c.bf16 %v3303_v25, %v3301_v6 }
 0x725   :  { %v3307_v42 = vpop.eup %3306  ;;  %v1736_v18 = vpop.trf.xlu0 }
 0x726   :  { %v1649_v11 = vadd.f32 %v3295_v3, %v1648_v7  ;;  %2987 = vmatpush3.bf16.msra.mxu1 %v1672_v13  ;;  %v3309_v38 = vpop.eup %3308  ;;  %v1671_v33 = vpack.c.bf16 %v3307_v42, %v3305_v17 }
 0x727   :  { %2988 = vmatprep.subr.bf16.mxu1 %v3443_v27  ;;  %v3311_v10 = vpop.eup %3310 }
 0x728   :  { %v1650_v24 = vadd.f32 %v3297_v41, %v1649_v11  ;;  %v1670_v34 = vpack.c.bf16 %v3311_v10, %v3309_v38 }
 0x729   :  { %v1737_v46 = vpop.trf.xlu0 }
 0x72a   :  { %v1651_v30 = vadd.f32 %v3299_v22, %v1650_v24  ;;  %2989 = vmatpush3.bf16.msra.mxu1 %v1671_v33 }
 0x72b   :  { %2990 = vmatprep.subr.bf16.mxu1 %v3443_v27 }
 0x72c   :  { %v1652_v43 = vadd.f32 %v3309_v38, %v1651_v30 }
 0x72d   :  { %v1738_v47 = vpop.trf.xlu0 }
 0x72e   :  { %v1653_v49 = vadd.f32 %v3311_v10, %v1652_v43  ;;  %2991 = vmatpush3.bf16.msra.mxu1 %v1670_v34 }
 0x72f   :  { %2992 = vmatprep.subr.bf16.mxu1 %v3443_v27 }
 0x730   :  { %v1654_v29 = vadd.f32 %v3305_v17, %v1653_v49 }
 0x732   :  { %v1655_v23 = vadd.f32 %v3307_v42, %v1654_v29  ;;  %2993 = vmatpush3.bf16.msra.mxu1 %v1669_v50 }
 0x733   :  { %2994 = vmatprep.subr.bf16.mxu1 %v3443_v27 }
 0x734   :  { %v1656_v31 = vadd.f32 %v3301_v6, %v1655_v23 }
 0x736   :  { %v1657_v35 = vadd.f32 %v3303_v25, %v1656_v31  ;;  %2995 = vmatpush3.bf16.msra.mxu1 %v1668_v51 }
 0x737   :  { %2996 = vmatprep.subr.bf16.mxu1 %v3443_v27 }
 0x738   :  { %v1658_v53 = vrot.slane %v1657_v35, 4 }
 0x73a   :  { %2997 = vmatpush3.bf16.msra.mxu1 %v1667_v61  ;;  %v1659_v48 = vadd.f32 %v1658_v53, %v1657_v35 }
 0x73b   :  { %2998 = vmatprep.subr.bf16.mxu1 %v3443_v27 }
 0x73c   :  { %v1660_v58 = vrot.slane %v1659_v48, 2 }
 0x73e   :  { %2999 = vmatpush3.bf16.msra.mxu1 %v1666_v52  ;;  %v1661_v55 = vadd.f32 %v1660_v58, %v1659_v48 }
 0x73f   :  { %3000 = vmatprep.subr.bf16.mxu1 %v3443_v27 }
 0x740   :  { %v1662_v12 = vrot.slane %v1661_v55, 1 }
 0x742   :  { %3001 = vmatpush3.bf16.msra.mxu1 %v1665_v4  ;;  %v1663_v39 = vadd.f32 %v1662_v12, %v1661_v55 }
 0x743   :  { %3006 = vmatprep.subr.bf16.mxu1 %v1721_v56 }
 0x744   :  { %3312 = vrcp.f32 %v1663_v39 }
 0x745   :  { %3003 = vmatmul.mubr.bf16.vlgmr.msra.gmra.mxu1 %v1664_v16 }
 0x746   :  { %3007 = vmatpush3.bf16.msra.mxu1 %v1721_v56  ;;  %3008 = vmatprep.mubr.msk.bf16.mxu1 %vm300_vm2, %v1731_v36 }
 0x747   :  { %3062 = vmatprep.subr.bf16.mxu1 %v3443_v27 }
 0x74d   :  { %3009 = vmatmul.mubr.msk.bf16.vlgmr.msra.gmra.mxu1 %vm300_vm2, %v1732_v37 }
 0x74e   :  { %3012 = vmatprep.mubr.msk.bf16.mxu1 %vm300_vm2, %v1733_v60 }
 0x751   :  { %v3313_v57 = vpop.eup %3312 }
 0x755   :  { %3013 = vmatmul.mubr.msk.bf16.gmra.mxu1 %vm300_vm2, %v1734_v62 }
 0x756   :  { %3016 = vmatprep.mubr.msk.bf16.mxu1 %vm300_vm2, %v1735_v0 }
 0x75d   :  { %3017 = vmatmul.mubr.msk.bf16.gmra.mxu1 %vm300_vm2, %v1736_v18 }
 0x75e   :  { %3020 = vmatprep.mubr.msk.bf16.mxu1 %vm300_vm2, %v1737_v46 }
 0x765   :  { %3021 = vmatmul.mubr.msk.bf16.gmra.mxu1 %vm300_vm2, %v1738_v47 }
 0x766   :  { %3078 = vmatprep.mubr.msk.bf16.mxu1 %vm3444_vm3, %v3443_v27 }
 0x805   :  { %v1707_v4 = vpop.f32.mrf.mxu1 }
 0x806   :  { %v1714_v14 = vmul.f32 %v3313_v57, %v1707_v4 }
 0x807   :  { %v3004_v20 = vpop.f32.mrf.mxu1 }
 0x808   :  { %1716 = vst [vmem:[#allocation2 + $0x20] sm:$0xff] %v1714_v14 }
 0x809   :  { %v1710_v63 = vpop.f32.mrf.mxu1 }
 0x80b   :  { %v3005_v52 = vpop.f32.mrf.mxu1 }
 0x80d   :  { %v3010_v26 = vpop.f32.mrf.mxu1 }
 0x80f   :  { %v1797_v2 = vpop.f32.mrf.mxu1 }
 0x811   :  { %v3011_v1 = vpop.f32.mrf.mxu1 }
 0x813   :  { %v1800_v21 = vpop.f32.mrf.mxu1 }
 0x815   :  { %v3014_v59 = vpop.f32.mrf.mxu1 }
 0x816   :  { %v1862_v13 = vmax.f32 %v3010_v26, %v3014_v59 }
 0x817   :  { %v1813_v15 = vpop.f32.mrf.mxu1 }
 0x818   :  { %v1860_v42 = vmax.f32 %v1797_v2, %v1813_v15 }
 0x819   :  { %v3015_v3 = vpop.f32.mrf.mxu1 }
 0x81a   :  { %v1863_v17 = vmax.f32 %v3011_v1, %v3015_v3 }
 0x81b   :  { %v1816_v41 = vpop.f32.mrf.mxu1 }
 0x81c   :  { %v1861_v30 = vmax.f32 %v1800_v21, %v1816_v41 }
 0x81d   :  { %v3825_v7 = vpop.f32.mrf.mxu1 }
 0x81e   :  { %v1866_v33 = vmax.f32 %v1862_v13, %v3825_v7 }
 0x81f   :  { %v1829_v22 = vpop.f32.mrf.mxu1 }
 0x820   :  { %v1864_v10 = vmax.f32 %v1860_v42, %v1829_v22 }
 0x821   :  { %v3827_v6 = vpop.f32.mrf.mxu1 }
 0x822   :  { %v1867_v38 = vmax.f32 %v1863_v17, %v3827_v6 }
 0x823   :  { %v1832_v11 = vpop.f32.mrf.mxu1 }
 0x824   :  { %v1865_v49 = vmax.f32 %v1861_v30, %v1832_v11 }
 0x825   :  { %v3022_v25 = vpop.f32.mrf.mxu1 }
 0x826   :  { %v1870_v23 = vmax.f32 %v1866_v33, %v3022_v25 }
 0x827   :  { %v1845_v24 = vpop.f32.mrf.mxu1 }
 0x828   :  { %v1868_v31 = vmax.f32 %v1864_v10, %v1845_v24 }
 0x829   :  { %v3023_v43 = vpop.f32.mrf.mxu1 }
 0x82a   :  { %v1871_v29 = vmax.f32 %v1867_v38, %v3023_v43 }
 0x82b   :  { %v1848_v34 = vpop.f32.mrf.mxu1 }
 0x82c   :  { %v1869_v50 = vmax.f32 %v1865_v49, %v1848_v34  ;;  %v1873_v35 = vmax.f32 %v1870_v23, %v1871_v29 }
 0x82e   :  { %v1872_v51 = vmax.f32 %v1868_v31, %v1869_v50 }
 0x830   :  { %v1874_v36 = vmax.f32 %v1872_v51, %v1873_v35 }
 0x832   :  { %v1875_v61 = vrot.slane %v1874_v36, 4 }
 0x834   :  { %v1876_v37 = vmax.f32 %v1874_v36, %v1875_v61 }
 0x836   :  { %v1877_v54 = vrot.slane %v1876_v37, 2 }
 0x838   :  { %v1878_v44 = vmax.f32 %v1876_v37, %v1877_v54 }
 0x83a   :  { %v1879_v45 = vrot.slane %v1878_v44, 1 }
 0x83c   :  { %v1880_v56 = vmax.f32 %v1878_v44, %v1879_v45 }
 0x83e   :  { %v1881_v16 = vsub.f32 %v1797_v2, %v1880_v56  ;;  %v1882_v60 = vsub.f32 %v1800_v21, %v1880_v56  ;;  %v1883_v62 = vsub.f32 %v3010_v26, %v1880_v56  ;;  %v1884_v0 = vsub.f32 %v3011_v1, %v1880_v56 }
 0x83f   :  { %v1885_v53 = vsub.f32 %v1813_v15, %v1880_v56  ;;  %v1886_v58 = vsub.f32 %v1816_v41, %v1880_v56  ;;  %v1887_v55 = vsub.f32 %v3014_v59, %v1880_v56  ;;  %v1888_v12 = vsub.f32 %v3015_v3, %v1880_v56 }
 0x840   :  { %v1897_v18 = vmul.f32 1.442695, %v1881_v16  ;;  %v1899_v46 = vmul.f32 1.442695, %v1882_v60  ;;  %v1901_v47 = vmul.f32 1.442695, %v1883_v62  ;;  %v1889_v57 = vsub.f32 %v1829_v22, %v1880_v56 }
 0x841   :  { %v1903_v48 = vmul.f32 1.442695, %v1884_v0  ;;  %v1905_v39 = vmul.f32 1.442695, %v1885_v53  ;;  %v1890_v4 = vsub.f32 %v1832_v11, %v1880_v56  ;;  %v1907_v14 = vmul.f32 1.442695, %v1886_v58 }
 0x842   :  { %3314 = vpow2.f32 %v1897_v18  ;;  %v1895_v20 = vsub.f32 %v3022_v25, %v1880_v56  ;;  %v1909_v63 = vmul.f32 1.442695, %v1887_v55  ;;  %v1896_v52 = vsub.f32 %v3023_v43, %v1880_v56 }
 0x843   :  { %3316 = vpow2.f32 %v1899_v46  ;;  %v1911_v26 = vmul.f32 1.442695, %v1888_v12  ;;  %v1893_v2 = vsub.f32 %v1845_v24, %v1880_v56  ;;  %v1913_v1 = vmul.f32 1.442695, %v1889_v57 }
 0x844   :  { %3318 = vpow2.f32 %v1901_v47  ;;  %v1894_v21 = vsub.f32 %v1848_v34, %v1880_v56  ;;  %v1915_v15 = vmul.f32 1.442695, %v1890_v4  ;;  %v1925_v41 = vmul.f32 1.442695, %v1895_v20  ;;  %v2016_v4 = vpop.trf.xlu1 }
 0x845   :  { %3320 = vpow2.f32 %v1903_v48  ;;  %v1891_v59 = vsub.f32 %v3825_v7, %v1880_v56  ;;  %v1927_v3 = vmul.f32 1.442695, %v1896_v52  ;;  %v1921_v22 = vmul.f32 1.442695, %v1893_v2  ;;  %v3418_v52 = vld [vmem:[%s3931_s3 + $0x8] ss:$0 sps:$4 sm:$0xff]  }
 0x846   :  { %3322 = vpow2.f32 %v1905_v39  ;;  %v1892_v25 = vsub.f32 %v3827_v6, %v1880_v56  ;;  %v1923_v17 = vmul.f32 1.442695, %v1894_v21  ;;  %v1950_v2 = vpack.c.bf16 %v3578_v8, %v3578_v8 }
 0x847   :  { %3324 = vpow2.f32 %v1907_v14  ;;  %v1917_v42 = vmul.f32 1.442695, %v1891_v59 }
 0x848   :  { %3326 = vpow2.f32 %v1909_v63  ;;  %v1919_v43 = vmul.f32 1.442695, %v1892_v25  ;;  %v2017_v20 = vpop.trf.xlu1  ;;  %v2004_v63 = vrot.slane %v3573_v5, 4 }
 0x849   :  { %3328 = vpow2.f32 %v1911_v26 }
 0x84a   :  { %3330 = vpow2.f32 %v1913_v1  ;;  %v2006_v26 = vsel %vm279_vm1, %v2004_v63, %v3418_v52 }
 0x84b   :  { %3332 = vpow2.f32 %v1915_v15 }
 0x84c   :  { %3334 = vpow2.f32 %v1925_v41  ;;  %v2018_v1 = vpop.trf.xlu1 }
 0x84d   :  { %3336 = vpow2.f32 %v1927_v3 }
 0x84e   :  { %3338 = vpow2.f32 %v1921_v22 }
 0x84f   :  { %v3832_v11 = vpop.eup %3314  ;;  %3340 = vpow2.f32 %v1923_v17 }
 0x850   :  { %v3835_v13 = vpop.eup %3316  ;;  %3342 = vpow2.f32 %v1917_v42  ;;  %v2019_v5 = vpop.trf.xlu1 }
 0x851   :  { %v3319_v24 = vpop.eup %3318  ;;  %v1929_v30 = vadd.f32 %v3835_v13, %v3832_v11  ;;  %v1951_v7 = vpack.c.bf16 %v3835_v13, %v3832_v11  ;;  %3344 = vpow2.f32 %v1919_v43 }
 0x852   :  { %v3321_v38 = vpop.eup %3320 }
 0x853   :  { %v1930_v33 = vadd.f32 %v3319_v24, %v1929_v30  ;;  %v1952_v6 = vpack.c.bf16 %v3321_v38, %v3319_v24  ;;  %v3323_v49 = vpop.eup %3322 }
 0x854   :  { %v3325_v34 = vpop.eup %3324  ;;  %v2020_v21 = vpop.trf.xlu1 }
 0x855   :  { %v1931_v10 = vadd.f32 %v3321_v38, %v1930_v33  ;;  %v3327_v23 = vpop.eup %3326  ;;  %v1953_v14 = vpack.c.bf16 %v3325_v34, %v3323_v49 }
 0x856   :  { %v3329_v50 = vpop.eup %3328 }
 0x857   :  { %v1932_v29 = vadd.f32 %v3323_v49, %v1931_v10  ;;  %v3331_v35 = vpop.eup %3330  ;;  %v1954_v57 = vpack.c.bf16 %v3329_v50, %v3327_v23 }
 0x858   :  { %v3333_v36 = vpop.eup %3332  ;;  %v2021_v15 = vpop.trf.xlu1 }
 0x859   :  { %v1933_v31 = vadd.f32 %v3325_v34, %v1932_v29  ;;  %v3335_v61 = vpop.eup %3334  ;;  %v1955_v12 = vpack.c.bf16 %v3333_v36, %v3331_v35 }
 0x85a   :  { %v3337_v54 = vpop.eup %3336 }
 0x85b   :  { %v1934_v51 = vadd.f32 %v3327_v23, %v1933_v31  ;;  %v3339_v44 = vpop.eup %3338  ;;  %v1958_v56 = vpack.c.bf16 %v3337_v54, %v3335_v61 }
 0x85c   :  { %v3341_v16 = vpop.eup %3340  ;;  %v2022_v8 = vpop.trf.xlu1 }
 0x85d   :  { %v1935_v37 = vadd.f32 %v3329_v50, %v1934_v51  ;;  %3025 = vmatpush3.bf16.msra.mxu0 %v1958_v56  ;;  %v3343_v62 = vpop.eup %3342  ;;  %v1957_v18 = vpack.c.bf16 %v3341_v16, %v3339_v44 }
 0x85e   :  { %3026 = vmatprep.subr.bf16.mxu0 %v3443_v27  ;;  %v3345_v46 = vpop.eup %3344 }
 0x85f   :  { %v1936_v45 = vadd.f32 %v3331_v35, %v1935_v37  ;;  %v1956_v48 = vpack.c.bf16 %v3345_v46, %v3343_v62 }
 0x860   :  { %v2023_v41 = vpop.trf.xlu1 }
 0x861   :  { %v1937_v60 = vadd.f32 %v3333_v36, %v1936_v45  ;;  %3027 = vmatpush3.bf16.msra.mxu0 %v1957_v18 }
 0x862   :  { %3028 = vmatprep.subr.bf16.mxu0 %v3443_v27 }
 0x863   :  { %v1938_v0 = vadd.f32 %v3343_v62, %v1937_v60 }
 0x865   :  { %v1939_v47 = vadd.f32 %v3345_v46, %v1938_v0  ;;  %3029 = vmatpush3.bf16.msra.mxu0 %v1956_v48 }
 0x866   :  { %3030 = vmatprep.subr.bf16.mxu0 %v3443_v27 }
 0x867   :  { %v1940_v53 = vadd.f32 %v3339_v44, %v1939_v47 }
 0x869   :  { %v1941_v58 = vadd.f32 %v3341_v16, %v1940_v53  ;;  %3031 = vmatpush3.bf16.msra.mxu0 %v1955_v12 }
 0x86a   :  { %3032 = vmatprep.subr.bf16.mxu0 %v3443_v27 }
 0x86b   :  { %v1942_v55 = vadd.f32 %v3335_v61, %v1941_v58 }
 0x86d   :  { %v1943_v39 = vadd.f32 %v3337_v54, %v1942_v55  ;;  %3033 = vmatpush3.bf16.msra.mxu0 %v1954_v57 }
 0x86e   :  { %3034 = vmatprep.subr.bf16.mxu0 %v3443_v27 }
 0x86f   :  { %v1944_v59 = vrot.slane %v1943_v39, 4 }
 0x871   :  { %3035 = vmatpush3.bf16.msra.mxu0 %v1953_v14  ;;  %v1945_v3 = vadd.f32 %v1944_v59, %v1943_v39 }
 0x872   :  { %3036 = vmatprep.subr.bf16.mxu0 %v3443_v27 }
 0x873   :  { %v1946_v22 = vrot.slane %v1945_v3, 2 }
 0x875   :  { %3037 = vmatpush3.bf16.msra.mxu0 %v1952_v6  ;;  %v1947_v11 = vadd.f32 %v1946_v22, %v1945_v3 }
 0x876   :  { %3038 = vmatprep.subr.bf16.mxu0 %v3443_v27 }
 0x877   :  { %v1948_v25 = vrot.slane %v1947_v11, 1 }
 0x879   :  { %3039 = vmatpush3.bf16.msra.mxu0 %v1951_v7  ;;  %v1949_v17 = vadd.f32 %v1948_v25, %v1947_v11 }
 0x87a   :  { %3044 = vmatprep.subr.bf16.mxu0 %v2006_v26 }
 0x87b   :  { %3346 = vrcp.f32 %v1949_v17 }
 0x87c   :  { %3041 = vmatmul.mubr.bf16.vlgmr.msra.gmra.mxu0 %v1950_v2 }
 0x87d   :  { %3045 = vmatpush3.bf16.msra.mxu0 %v2006_v26  ;;  %3046 = vmatprep.mubr.msk.bf16.mxu0 %vm300_vm2, %v2016_v4 }
 0x87e   :  { %3100 = vmatprep.subr.bf16.mxu0 %v3443_v27 }
 0x884   :  { %3047 = vmatmul.mubr.msk.bf16.vlgmr.msra.gmra.mxu0 %vm300_vm2, %v2017_v20 }
 0x885   :  { %3050 = vmatprep.mubr.msk.bf16.mxu0 %vm300_vm2, %v2018_v1 }
 0x888   :  { %v3347_v13 = vpop.eup %3346 }
 0x88c   :  { %3051 = vmatmul.mubr.msk.bf16.gmra.mxu0 %vm300_vm2, %v2019_v5 }
 0x88d   :  { %3054 = vmatprep.mubr.msk.bf16.mxu0 %vm300_vm2, %v2020_v21 }
 0x894   :  { %3055 = vmatmul.mubr.msk.bf16.gmra.mxu0 %vm300_vm2, %v2021_v15 }
 0x895   :  { %3058 = vmatprep.mubr.msk.bf16.mxu0 %vm300_vm2, %v2022_v8 }
 0x89c   :  { %3059 = vmatmul.mubr.msk.bf16.gmra.mxu0 %vm300_vm2, %v2023_v41 }
 0x89d   :  { %3116 = vmatprep.mubr.msk.bf16.mxu0 %vm3444_vm3, %v3443_v27 }
 0x93c   :  { %v1993_v24 = vpop.f32.mrf.mxu0 }
 0x93d   :  { %v2000_v42 = vmul.f32 %v3347_v13, %v1993_v24 }
 0x93e   :  { %v3042_v30 = vpop.f32.mrf.mxu0 }
 0x93f   :  { %2001 = vst [vmem:[#allocation2 + $0x28] sm:$0xff] %v2000_v42 }
 0x940   :  { %v1996_v7 = vpop.f32.mrf.mxu0 }
 0x942   :  { %v3043_v38 = vpop.f32.mrf.mxu0 }
 0x944   :  { %v3048_v43 = vpop.f32.mrf.mxu0 }
 0x946   :  { %v2082_v33 = vpop.f32.mrf.mxu0 }
 0x948   :  { %v3049_v6 = vpop.f32.mrf.mxu0 }
 0x94a   :  { %v2085_v10 = vpop.f32.mrf.mxu0 }
 0x94c   :  { %v3052_v49 = vpop.f32.mrf.mxu0 }
 0x94d   :  { %v2147_v54 = vmax.f32 %v3048_v43, %v3052_v49 }
 0x94e   :  { %v2098_v29 = vpop.f32.mrf.mxu0 }
 0x94f   :  { %v2145_v44 = vmax.f32 %v2082_v33, %v2098_v29 }
 0x950   :  { %v3053_v34 = vpop.f32.mrf.mxu0 }
 0x951   :  { %v2148_v61 = vmax.f32 %v3049_v6, %v3053_v34 }
 0x952   :  { %v2101_v23 = vpop.f32.mrf.mxu0 }
 0x953   :  { %v2146_v45 = vmax.f32 %v2085_v10, %v2101_v23 }
 0x954   :  { %v3866_v31 = vpop.f32.mrf.mxu0 }
 0x955   :  { %v2151_v60 = vmax.f32 %v2147_v54, %v3866_v31 }
 0x956   :  { %v2114_v50 = vpop.f32.mrf.mxu0 }
 0x957   :  { %v2149_v62 = vmax.f32 %v2145_v44, %v2114_v50 }
 0x958   :  { %v3868_v35 = vpop.f32.mrf.mxu0 }
 0x959   :  { %v2152_v56 = vmax.f32 %v2148_v61, %v3868_v35 }
 0x95a   :  { %v2117_v51 = vpop.f32.mrf.mxu0 }
 0x95b   :  { %v2150_v0 = vmax.f32 %v2146_v45, %v2117_v51 }
 0x95c   :  { %v3060_v36 = vpop.f32.mrf.mxu0 }
 0x95d   :  { %v2155_v47 = vmax.f32 %v2151_v60, %v3060_v36 }
 0x95e   :  { %v2130_v37 = vpop.f32.mrf.mxu0 }
 0x95f   :  { %v2153_v53 = vmax.f32 %v2149_v62, %v2130_v37 }
 0x960   :  { %v3061_v16 = vpop.f32.mrf.mxu0 }
 0x961   :  { %v2156_v18 = vmax.f32 %v2152_v56, %v3061_v16 }
 0x962   :  { %v2133_v46 = vpop.f32.mrf.mxu0 }
 0x963   :  { %v2154_v48 = vmax.f32 %v2150_v0, %v2133_v46  ;;  %v2158_v58 = vmax.f32 %v2155_v47, %v2156_v18 }
 0x965   :  { %v2157_v55 = vmax.f32 %v2153_v53, %v2154_v48 }
 0x967   :  { %v2159_v12 = vmax.f32 %v2157_v55, %v2158_v58 }
 0x969   :  { %v2160_v39 = vrot.slane %v2159_v12, 4 }
 0x96b   :  { %v2161_v57 = vmax.f32 %v2159_v12, %v2160_v39 }
 0x96d   :  { %v2162_v4 = vrot.slane %v2161_v57, 2 }
 0x96f   :  { %v2163_v14 = vmax.f32 %v2161_v57, %v2162_v4 }
 0x971   :  { %v2164_v20 = vrot.slane %v2163_v14, 1 }
 0x973   :  { %v2165_v63 = vmax.f32 %v2163_v14, %v2164_v20 }
 0x975   :  { %v2166_v52 = vsub.f32 %v2082_v33, %v2165_v63  ;;  %v2167_v26 = vsub.f32 %v2085_v10, %v2165_v63  ;;  %v2168_v2 = vsub.f32 %v3048_v43, %v2165_v63  ;;  %v2169_v1 = vsub.f32 %v3049_v6, %v2165_v63 }
 0x976   :  { %v2170_v8 = vsub.f32 %v2098_v29, %v2165_v63  ;;  %v2171_v59 = vsub.f32 %v2101_v23, %v2165_v63  ;;  %v2172_v3 = vsub.f32 %v3052_v49, %v2165_v63  ;;  %v2173_v22 = vsub.f32 %v3053_v34, %v2165_v63 }
 0x977   :  { %v2182_v5 = vmul.f32 1.442695, %v2166_v52  ;;  %v2184_v21 = vmul.f32 1.442695, %v2167_v26  ;;  %v2186_v15 = vmul.f32 1.442695, %v2168_v2  ;;  %v2174_v25 = vsub.f32 %v2114_v50, %v2165_v63 }
 0x978   :  { %v2188_v41 = vmul.f32 1.442695, %v2169_v1  ;;  %v2190_v11 = vmul.f32 1.442695, %v2170_v8  ;;  %v2175_v17 = vsub.f32 %v2117_v51, %v2165_v63  ;;  %v2192_v13 = vmul.f32 1.442695, %v2171_v59 }
 0x979   :  { %3348 = vpow2.f32 %v2182_v5  ;;  %v2180_v24 = vsub.f32 %v3060_v36, %v2165_v63  ;;  %v2194_v42 = vmul.f32 1.442695, %v2172_v3  ;;  %v2181_v30 = vsub.f32 %v3061_v16, %v2165_v63 }
 0x97a   :  { %3350 = vpow2.f32 %v2184_v21  ;;  %v2196_v7 = vmul.f32 1.442695, %v2173_v22  ;;  %v2178_v38 = vsub.f32 %v2130_v37, %v2165_v63  ;;  %v2198_v43 = vmul.f32 1.442695, %v2174_v25 }
 0x97b   :  { %3352 = vpow2.f32 %v2186_v15  ;;  %v2179_v33 = vsub.f32 %v2133_v46, %v2165_v63  ;;  %v2200_v6 = vmul.f32 1.442695, %v2175_v17  ;;  %v2210_v10 = vmul.f32 1.442695, %v2180_v24 }
 0x97c   :  { %3354 = vpow2.f32 %v2188_v41  ;;  %v2176_v49 = vsub.f32 %v3866_v31, %v2165_v63  ;;  %v2212_v29 = vmul.f32 1.442695, %v2181_v30  ;;  %v2206_v34 = vmul.f32 1.442695, %v2178_v38 }
 0x97d   :  { %3356 = vpow2.f32 %v2190_v11  ;;  %v2177_v50 = vsub.f32 %v3868_v35, %v2165_v63  ;;  %v2208_v51 = vmul.f32 1.442695, %v2179_v33  ;;  %v2301_v11 = vpop.trf.xlu0  ;;  %v267_v24 = vadd.f32 %v3692_v40, %v3717_v32 }
 0x97e   :  { %3358 = vpow2.f32 %v2192_v13  ;;  %v2202_v37 = vmul.f32 1.442695, %v2176_v49  ;;  %v2289_v13 = vrot.slane %v3582_v19, 4 }
 0x97f   :  { %3360 = vpow2.f32 %v2194_v42  ;;  %v2204_v45 = vmul.f32 1.442695, %v2177_v50  ;;  %v3419_v42 = vld [vmem:[%s3931_s3 + $0xc] ss:$0 sps:$4 sm:$0xff]   ;;  %s3445_s3 = smov [#allocation2]  }
 0x980   :  { %3362 = vpow2.f32 %v2196_v7  ;;  %v2291_v30 = vsel %vm279_vm1, %v2289_v13, %v3419_v42  ;;  %v2235_v7 = vpack.c.bf16 %v267_v24, %v267_v24  ;;  %s2577_s18 = sshll.u32 %s3445_s3, 4  ;;  %s2578_s18 = int_to_ptr.vmem [resolvable:$true] %s2577_s18 }
 0x981   :  { %3364 = vpow2.f32 %v2198_v43  ;;  %v2302_v17 = vpop.trf.xlu0  ;;  %s3420_s19 = scalar_lea.vmem %s2578_s18, 1024  ;;  %p3425_p1 = scmp.lt.s32.totalorder %s2578_s18, %s2578_s18 }
 0x982   :  { %3366 = vpow2.f32 %v2200_v6  ;;  %p3421_p0 = scmp.ne.s32.totalorder %s2578_s18, %s3420_s19  ;;  %p3426_p2 = scmp.lt.s32.totalorder %s3420_s19, %s3420_s19 }
 0x983   :  { %3368 = vpow2.f32 %v2210_v10 }
 0x984   :  { %3370 = vpow2.f32 %v2212_v29  ;;  %p3427_p3 = por %p3426_p2, %p3425_p1 }
 0x985   :  { %3372 = vpow2.f32 %v2206_v34  ;;  %v2303_v38 = vpop.trf.xlu0 }
 0x986   :  { %v3873_v23 = vpop.eup %3348  ;;  %3374 = vpow2.f32 %v2208_v51  ;;  %p3428_p4 = pnand %p3427_p3, %p3421_p0 }
 0x987   :  { %v3876_v36 = vpop.eup %3350  ;;  %3376 = vpow2.f32 %v2202_v37 }
 0x988   :  { %v3353_v61 = vpop.eup %3352  ;;  %v2214_v54 = vadd.f32 %v3876_v36, %v3873_v23  ;;  %v2236_v31 = vpack.c.bf16 %v3876_v36, %v3873_v23  ;;  %3378 = vpow2.f32 %v2204_v45 }
 0x989   :  { %v3355_v44 = vpop.eup %3354  ;;  %v2304_v19 = vpop.trf.xlu0 }
 0x98a   :  { %v2215_v56 = vadd.f32 %v3353_v61, %v2214_v54  ;;  %v2237_v35 = vpack.c.bf16 %v3355_v44, %v3353_v61  ;;  %v3357_v60 = vpop.eup %3356 }
 0x98b   :  { %v3359_v0 = vpop.eup %3358 }
 0x98c   :  { %v2216_v16 = vadd.f32 %v3355_v44, %v2215_v56  ;;  %v3361_v18 = vpop.eup %3360  ;;  %v2238_v25 = vpack.c.bf16 %v3359_v0, %v3357_v60 }
 0x98d   :  { %v3363_v47 = vpop.eup %3362  ;;  %v2305_v40 = vpop.trf.xlu0 }
 0x98e   :  { %v2217_v62 = vadd.f32 %v3357_v60, %v2216_v16  ;;  %v3365_v53 = vpop.eup %3364  ;;  %v2239_v22 = vpack.c.bf16 %v3363_v47, %v3361_v18 }
 0x98f   :  { %v3367_v58 = vpop.eup %3366 }
 0x990   :  { %v2218_v46 = vadd.f32 %v3359_v0, %v2217_v62  ;;  %v3369_v55 = vpop.eup %3368  ;;  %v2240_v59 = vpack.c.bf16 %v3367_v58, %v3365_v53 }
 0x991   :  { %v3371_v39 = vpop.eup %3370  ;;  %v2306_v32 = vpop.trf.xlu0 }
 0x992   :  { %v2219_v48 = vadd.f32 %v3361_v18, %v2218_v46  ;;  %v3373_v57 = vpop.eup %3372  ;;  %v2243_v14 = vpack.c.bf16 %v3371_v39, %v3369_v55 }
 0x993   :  { %v3375_v20 = vpop.eup %3374 }
 0x994   :  { %v2220_v12 = vadd.f32 %v3363_v47, %v2219_v48  ;;  %3063 = vmatpush3.bf16.msra.mxu1 %v2243_v14  ;;  %v3377_v52 = vpop.eup %3376  ;;  %v2242_v2 = vpack.c.bf16 %v3375_v20, %v3373_v57 }
 0x995   :  { %3064 = vmatprep.subr.bf16.mxu1 %v3443_v27  ;;  %v3379_v1 = vpop.eup %3378  ;;  %v2307_v43 = vpop.trf.xlu0 }
 0x996   :  { %v2221_v4 = vadd.f32 %v3365_v53, %v2220_v12  ;;  %v2241_v15 = vpack.c.bf16 %v3379_v1, %v3377_v52 }
 0x998   :  { %v2222_v63 = vadd.f32 %v3367_v58, %v2221_v4  ;;  %3065 = vmatpush3.bf16.msra.mxu1 %v2242_v2 }
 0x999   :  { %3066 = vmatprep.subr.bf16.mxu1 %v3443_v27  ;;  %v2308_v33 = vpop.trf.xlu0 }
 0x99a   :  { %v2223_v26 = vadd.f32 %v3377_v52, %v2222_v63 }
 0x99c   :  { %v2224_v5 = vadd.f32 %v3379_v1, %v2223_v26  ;;  %3067 = vmatpush3.bf16.msra.mxu1 %v2241_v15 }
 0x99d   :  { %3068 = vmatprep.subr.bf16.mxu1 %v3443_v27 }
 0x99e   :  { %v2225_v21 = vadd.f32 %v3373_v57, %v2224_v5 }
 0x9a0   :  { %v2226_v8 = vadd.f32 %v3375_v20, %v2225_v21  ;;  %3069 = vmatpush3.bf16.msra.mxu1 %v2240_v59 }
 0x9a1   :  { %3070 = vmatprep.subr.bf16.mxu1 %v3443_v27 }
 0x9a2   :  { %v2227_v41 = vadd.f32 %v3369_v55, %v2226_v8 }
 0x9a4   :  { %v2228_v3 = vadd.f32 %v3371_v39, %v2227_v41  ;;  %3071 = vmatpush3.bf16.msra.mxu1 %v2239_v22 }
 0x9a5   :  { %3072 = vmatprep.subr.bf16.mxu1 %v3443_v27 }
 0x9a6   :  { %v2229_v6 = vrot.slane %v2228_v3, 4 }
 0x9a8   :  { %3073 = vmatpush3.bf16.msra.mxu1 %v2238_v25  ;;  %v2230_v10 = vadd.f32 %v2229_v6, %v2228_v3 }
 0x9a9   :  { %3074 = vmatprep.subr.bf16.mxu1 %v3443_v27 }
 0x9aa   :  { %v2231_v49 = vrot.slane %v2230_v10, 2 }
 0x9ac   :  { %3075 = vmatpush3.bf16.msra.mxu1 %v2237_v35  ;;  %v2232_v29 = vadd.f32 %v2231_v49, %v2230_v10 }
 0x9ad   :  { %3076 = vmatprep.subr.bf16.mxu1 %v3443_v27 }
 0x9ae   :  { %v2233_v34 = vrot.slane %v2232_v29, 1 }
 0x9b0   :  { %3077 = vmatpush3.bf16.msra.mxu1 %v2236_v31  ;;  %v2234_v23 = vadd.f32 %v2233_v34, %v2232_v29 }
 0x9b1   :  { %3082 = vmatprep.subr.bf16.mxu1 %v2291_v30 }
 0x9b2   :  { %3380 = vrcp.f32 %v2234_v23 }
 0x9b3   :  { %3079 = vmatmul.mubr.bf16.vlgmr.msra.gmra.mxu1 %v2235_v7 }
 0x9b4   :  { %3083 = vmatpush3.bf16.msra.mxu1 %v2291_v30  ;;  %3084 = vmatprep.mubr.msk.bf16.mxu1 %vm300_vm2, %v2301_v11 }
 0x9bb   :  { %3085 = vmatmul.mubr.msk.bf16.vlgmr.msra.gmra.mxu1 %vm300_vm2, %v2302_v17 }
 0x9bc   :  { %3088 = vmatprep.mubr.msk.bf16.mxu1 %vm300_vm2, %v2303_v38 }
 0x9bf   :  { %v3381_v50 = vpop.eup %3380 }
 0x9c3   :  { %3089 = vmatmul.mubr.msk.bf16.gmra.mxu1 %vm300_vm2, %v2304_v19 }
 0x9c4   :  { %3092 = vmatprep.mubr.msk.bf16.mxu1 %vm300_vm2, %v2305_v40 }
 0x9cb   :  { %3093 = vmatmul.mubr.msk.bf16.gmra.mxu1 %vm300_vm2, %v2306_v32 }
 0x9cc   :  { %3096 = vmatprep.mubr.msk.bf16.mxu1 %vm300_vm2, %v2307_v43 }
 0x9d3   :  { %3097 = vmatmul.mubr.msk.bf16.gmra.mxu1 %vm300_vm2, %v2308_v33 }
 0xa73   :  { %v2278_v51 = vpop.f32.mrf.mxu1 }
 0xa74   :  { %v2285_v36 = vmul.f32 %v3381_v50, %v2278_v51 }
 0xa75   :  { %v3080_v61 = vpop.f32.mrf.mxu1 }
 0xa76   :  { %2286 = vst [vmem:[#allocation2 + $0x30] sm:$0xff] %v2285_v36 }
 0xa77   :  { %v2281_v37 = vpop.f32.mrf.mxu1 }
 0xa79   :  { %v3081_v54 = vpop.f32.mrf.mxu1 }
 0xa7b   :  { %v3086_v31 = vpop.f32.mrf.mxu1 }
 0xa7d   :  { %v2367_v44 = vpop.f32.mrf.mxu1 }
 0xa7f   :  { %v3087_v45 = vpop.f32.mrf.mxu1 }
 0xa81   :  { %v2370_v56 = vpop.f32.mrf.mxu1 }
 0xa83   :  { %v3090_v35 = vpop.f32.mrf.mxu1 }
 0xa84   :  { %v2432_v55 = vmax.f32 %v3086_v31, %v3090_v35 }
 0xa85   :  { %v2383_v16 = vpop.f32.mrf.mxu1 }
 0xa86   :  { %v2430_v12 = vmax.f32 %v2367_v44, %v2383_v16 }
 0xa87   :  { %v3091_v60 = vpop.f32.mrf.mxu1 }
 0xa88   :  { %v2433_v48 = vmax.f32 %v3087_v45, %v3091_v60 }
 0xa89   :  { %v2386_v62 = vpop.f32.mrf.mxu1 }
 0xa8a   :  { %v2431_v39 = vmax.f32 %v2370_v56, %v2386_v62 }
 0xa8b   :  { %v3904_v0 = vpop.f32.mrf.mxu1 }
 0xa8c   :  { %v2436_v14 = vmax.f32 %v2432_v55, %v3904_v0 }
 0xa8d   :  { %v2399_v18 = vpop.f32.mrf.mxu1 }
 0xa8e   :  { %v2434_v20 = vmax.f32 %v2430_v12, %v2399_v18 }
 0xa8f   :  { %v3906_v46 = vpop.f32.mrf.mxu1 }
 0xa90   :  { %v2437_v57 = vmax.f32 %v2433_v48, %v3906_v46 }
 0xa91   :  { %v2402_v47 = vpop.f32.mrf.mxu1 }
 0xa92   :  { %v2435_v63 = vmax.f32 %v2431_v39, %v2402_v47 }
 0xa93   :  { %v3098_v53 = vpop.f32.mrf.mxu1 }
 0xa94   :  { %v2440_v2 = vmax.f32 %v2436_v14, %v3098_v53 }
 0xa95   :  { %v2415_v58 = vpop.f32.mrf.mxu1 }
 0xa96   :  { %v2438_v1 = vmax.f32 %v2434_v20, %v2415_v58 }
 0xa97   :  { %v3099_v4 = vpop.f32.mrf.mxu1 }
 0xa98   :  { %v2441_v52 = vmax.f32 %v2437_v57, %v3099_v4 }
 0xa99   :  { %v2418_v26 = vpop.f32.mrf.mxu1 }
 0xa9a   :  { %v2439_v5 = vmax.f32 %v2435_v63, %v2418_v26  ;;  %v2443_v21 = vmax.f32 %v2440_v2, %v2441_v52 }
 0xa9c   :  { %v2442_v15 = vmax.f32 %v2438_v1, %v2439_v5 }
 0xa9e   :  { %v2444_v8 = vmax.f32 %v2442_v15, %v2443_v21 }
 0xaa0   :  { %v2445_v41 = vrot.slane %v2444_v8, 4 }
 0xaa2   :  { %v2446_v59 = vmax.f32 %v2444_v8, %v2445_v41 }
 0xaa4   :  { %v2447_v3 = vrot.slane %v2446_v59, 2 }
 0xaa6   :  { %v2448_v22 = vmax.f32 %v2446_v59, %v2447_v3 }
 0xaa8   :  { %v2449_v11 = vrot.slane %v2448_v22, 1 }
 0xaaa   :  { %v2450_v25 = vmax.f32 %v2448_v22, %v2449_v11 }
 0xaac   :  { %v2451_v17 = vsub.f32 %v2367_v44, %v2450_v25  ;;  %v2452_v13 = vsub.f32 %v2370_v56, %v2450_v25  ;;  %v2453_v24 = vsub.f32 %v3086_v31, %v2450_v25  ;;  %v2454_v42 = vsub.f32 %v3087_v45, %v2450_v25 }
 0xaad   :  { %v2455_v19 = vsub.f32 %v2383_v16, %v2450_v25  ;;  %v2456_v32 = vsub.f32 %v2386_v62, %v2450_v25  ;;  %v2457_v43 = vsub.f32 %v3090_v35, %v2450_v25  ;;  %v2458_v33 = vsub.f32 %v3091_v60, %v2450_v25 }
 0xaae   :  { %v2467_v30 = vmul.f32 1.442695, %v2451_v17  ;;  %v2469_v7 = vmul.f32 1.442695, %v2452_v13  ;;  %v2471_v38 = vmul.f32 1.442695, %v2453_v24  ;;  %v2459_v10 = vsub.f32 %v2399_v18, %v2450_v25 }
 0xaaf   :  { %v2473_v40 = vmul.f32 1.442695, %v2454_v42  ;;  %v2475_v6 = vmul.f32 1.442695, %v2455_v19  ;;  %v2460_v49 = vsub.f32 %v2402_v47, %v2450_v25  ;;  %v2477_v29 = vmul.f32 1.442695, %v2456_v32 }
 0xab0   :  { %3382 = vpow2.f32 %v2467_v30  ;;  %v2465_v34 = vsub.f32 %v3098_v53, %v2450_v25  ;;  %v2479_v23 = vmul.f32 1.442695, %v2457_v43  ;;  %v2466_v50 = vsub.f32 %v3099_v4, %v2450_v25 }
 0xab1   :  { %3384 = vpow2.f32 %v2469_v7  ;;  %v2481_v51 = vmul.f32 1.442695, %v2458_v33  ;;  %v2463_v36 = vsub.f32 %v2415_v58, %v2450_v25  ;;  %v2483_v61 = vmul.f32 1.442695, %v2459_v10 }
 0xab2   :  { %3386 = vpow2.f32 %v2471_v38  ;;  %v2464_v37 = vsub.f32 %v2418_v26, %v2450_v25  ;;  %v2485_v54 = vmul.f32 1.442695, %v2460_v49  ;;  %v2495_v31 = vmul.f32 1.442695, %v2465_v34 }
 0xab3   :  { %3388 = vpow2.f32 %v2473_v40  ;;  %v2461_v44 = vsub.f32 %v3904_v0, %v2450_v25  ;;  %v2497_v45 = vmul.f32 1.442695, %v2466_v50  ;;  %v2491_v56 = vmul.f32 1.442695, %v2463_v36 }
 0xab4   :  { %3390 = vpow2.f32 %v2475_v6  ;;  %v2462_v16 = vsub.f32 %v3906_v46, %v2450_v25  ;;  %v2493_v60 = vmul.f32 1.442695, %v2464_v37  ;;  %v271_v43 = vadd.f32 %v3696_v28, %v3763_v9 }
 0xab5   :  { %3392 = vpow2.f32 %v2477_v29  ;;  %v2487_v47 = vmul.f32 1.442695, %v2461_v44 }
 0xab6   :  { %3394 = vpow2.f32 %v2479_v23  ;;  %v2489_v58 = vmul.f32 1.442695, %v2462_v16  ;;  %v2520_v33 = vpack.c.bf16 %v271_v43, %v271_v43 }
 0xab7   :  { %3396 = vpow2.f32 %v2481_v51 }
 0xab8   :  { %3398 = vpow2.f32 %v2483_v61 }
 0xab9   :  { %3400 = vpow2.f32 %v2485_v54 }
 0xaba   :  { %3402 = vpow2.f32 %v2495_v31 }
 0xabb   :  { %3404 = vpow2.f32 %v2497_v45 }
 0xabc   :  { %3406 = vpow2.f32 %v2491_v56 }
 0xabd   :  { %v3911_v35 = vpop.eup %3382  ;;  %3408 = vpow2.f32 %v2493_v60 }
 0xabe   :  { %v3385_v62 = vpop.eup %3384  ;;  %3410 = vpow2.f32 %v2487_v47 }
 0xabf   :  { %v3387_v18 = vpop.eup %3386  ;;  %v2499_v53 = vadd.f32 %v3385_v62, %v3911_v35  ;;  %v2521_v48 = vpack.c.bf16 %v3385_v62, %v3911_v35  ;;  %3412 = vpow2.f32 %v2489_v58 }
 0xac0   :  { %v3389_v0 = vpop.eup %3388 }
 0xac1   :  { %v2500_v55 = vadd.f32 %v3387_v18, %v2499_v53  ;;  %v2522_v12 = vpack.c.bf16 %v3389_v0, %v3387_v18  ;;  %v3391_v46 = vpop.eup %3390 }
 0xac2   :  { %v3393_v4 = vpop.eup %3392 }
 0xac3   :  { %v2501_v39 = vadd.f32 %v3389_v0, %v2500_v55  ;;  %v3395_v14 = vpop.eup %3394  ;;  %v2523_v32 = vpack.c.bf16 %v3393_v4, %v3391_v46 }
 0xac4   :  { %v3397_v63 = vpop.eup %3396 }
 0xac5   :  { %v2502_v57 = vadd.f32 %v3391_v46, %v2501_v39  ;;  %v3399_v52 = vpop.eup %3398  ;;  %v2524_v40 = vpack.c.bf16 %v3397_v63, %v3395_v14 }
 0xac6   :  { %v3401_v2 = vpop.eup %3400 }
 0xac7   :  { %v2503_v20 = vadd.f32 %v3393_v4, %v2502_v57  ;;  %v3403_v1 = vpop.eup %3402  ;;  %v2525_v38 = vpack.c.bf16 %v3401_v2, %v3399_v52 }
 0xac8   :  { %v3405_v21 = vpop.eup %3404 }
 0xac9   :  { %v2504_v26 = vadd.f32 %v3395_v14, %v2503_v20  ;;  %v3407_v15 = vpop.eup %3406  ;;  %v2528_v41 = vpack.c.bf16 %v3405_v21, %v3403_v1 }
 0xaca   :  { %v3409_v59 = vpop.eup %3408 }
 0xacb   :  { %v2505_v5 = vadd.f32 %v3397_v63, %v2504_v26  ;;  %3101 = vmatpush3.bf16.msra.mxu0 %v2528_v41  ;;  %v3411_v22 = vpop.eup %3410  ;;  %v2527_v25 = vpack.c.bf16 %v3409_v59, %v3407_v15 }
 0xacc   :  { %3102 = vmatprep.subr.bf16.mxu0 %v3443_v27  ;;  %v3413_v17 = vpop.eup %3412 }
 0xacd   :  { %v2506_v8 = vadd.f32 %v3399_v52, %v2505_v5  ;;  %v2526_v42 = vpack.c.bf16 %v3413_v17, %v3411_v22 }
 0xacf   :  { %v2507_v3 = vadd.f32 %v3401_v2, %v2506_v8  ;;  %3103 = vmatpush3.bf16.msra.mxu0 %v2527_v25 }
 0xad0   :  { %3104 = vmatprep.subr.bf16.mxu0 %v3443_v27 }
 0xad1   :  { %v2508_v11 = vadd.f32 %v3411_v22, %v2507_v3 }
 0xad3   :  { %v2509_v13 = vadd.f32 %v3413_v17, %v2508_v11  ;;  %3105 = vmatpush3.bf16.msra.mxu0 %v2526_v42 }
 0xad4   :  { %3106 = vmatprep.subr.bf16.mxu0 %v3443_v27 }
 0xad5   :  { %v2510_v24 = vadd.f32 %v3407_v15, %v2509_v13 }
 0xad7   :  { %v2511_v30 = vadd.f32 %v3409_v59, %v2510_v24  ;;  %3107 = vmatpush3.bf16.msra.mxu0 %v2525_v38 }
 0xad8   :  { %3108 = vmatprep.subr.bf16.mxu0 %v3443_v27 }
 0xad9   :  { %v2512_v7 = vadd.f32 %v3403_v1, %v2511_v30 }
 0xadb   :  { %v2513_v19 = vadd.f32 %v3405_v21, %v2512_v7  ;;  %3109 = vmatpush3.bf16.msra.mxu0 %v2524_v40 }
 0xadc   :  { %3110 = vmatprep.subr.bf16.mxu0 %v3443_v27 }
 0xadd   :  { %v2514_v6 = vrot.slane %v2513_v19, 4 }
 0xadf   :  { %3111 = vmatpush3.bf16.msra.mxu0 %v2523_v32  ;;  %v2515_v10 = vadd.f32 %v2514_v6, %v2513_v19 }
 0xae0   :  { %3112 = vmatprep.subr.bf16.mxu0 %v3443_v27 }
 0xae1   :  { %v2516_v49 = vrot.slane %v2515_v10, 2 }
 0xae3   :  { %3113 = vmatpush3.bf16.msra.mxu0 %v2522_v12  ;;  %v2517_v29 = vadd.f32 %v2516_v49, %v2515_v10 }
 0xae4   :  { %3114 = vmatprep.subr.bf16.mxu0 %v3443_v27 }
 0xae5   :  { %v2518_v34 = vrot.slane %v2517_v29, 1 }
 0xae7   :  { %3115 = vmatpush3.bf16.msra.mxu0 %v2521_v48  ;;  %v2519_v23 = vadd.f32 %v2518_v34, %v2517_v29 }
 0xae9   :  { %3414 = vrcp.f32 %v2519_v23 }
 0xaea   :  { %3117 = vmatmul.mubr.bf16.vlgmr.msra.gmra.mxu0 %v2520_v33 }
 0xaf6   :  { %v3415_v50 = vpop.eup %3414 }
 0xbaa   :  { %v2563_v51 = vpop.f32.mrf.mxu0 }
 0xbab   :  { %v2570_v36 = vmul.f32 %v3415_v50, %v2563_v51 }
 0xbac   :  { %v3118_v61 = vpop.f32.mrf.mxu0 }
 0xbad   :  { %2571 = vst [vmem:[#allocation2 + $0x38] sm:$0xff] %v2570_v36 }
 0xbae   :  { %v2566_v28 = vpop.f32.mrf.mxu0 }
 0xbaf   :  { %3431 = shalt.err (!%p3428_p4)
}
 0xbb0   :  { %s3446_s20 = smov 128   ;;  %s3447_s21 = smov 8   ;;  %v3119_v27 = vpop.f32.mrf.mxu0 }
 0xbb1   :  { %2583 = dma.vmem_to_hbm [thread:$0]  %s2578_s18, 1024, %s3932_s4, [#allocation3], %s3446_s20, %s3446_s20, %s3447_s21  }
 0xbb2   :  { %3440 = dma.done.wait [#allocation3], 1024  }
 0xbb3   :  { %3441 = vsyncadd [#allocation3], 4294966272 }
 0xbb4   :  { %2587 = vsyncpa [#allocation3], 1 }

</bundles_post_ra>
